<compile_context>
chip_gen: v7x
topology: tpu7x:2x2x1
jax: 0.10.0
libtpu: 0.0.40
codegen_flags: <defaults>
</compile_context>

<pallas_src>
import functools

import jax
import jax.numpy as jnp
from jax.experimental import pallas as pl
from jax.experimental.pallas import tpu as pltpu

TAU = 2.0           # MultiStepLIFNode(tau=2.0)
V_TH = 1.0          # v_threshold
BN_EPS = 1e-5       # nn.BatchNorm2d default eps
LANE = 128


def _round_up(x, m):
    return ((x + m - 1) // m) * m


def _vmem_budget():
    # v5e/v6e: 128 MiB VMEM per core; v7x: 64 MiB per TensorCore -> size to chip.
    try:
        cap = int(pltpu.get_tpu_info().vmem_capacity_bytes)
    except Exception:
        cap = 64 * 1024 * 1024
    return max(16 * 1024 * 1024, min(cap // 2, 64 * 1024 * 1024))


def _pick_tm(M, K, N, *, budget, out_bytes=2, want=1024):
    tm = min(want, _round_up(max(M, 8), 8))

    def fits(t):
        # double-buffered x tile + double-buffered out tile + f32 scratch + weights
        return (2 * t * K * 2 + 2 * t * N * out_bytes + t * N * 4
                + K * N * 2 + 2 * N * 4) <= int(budget * 0.8)

    while tm > 8 and not fits(tm):
        tm = _round_up(tm // 2, 8)
    # keep >=2 row tiles so both v7x TensorCores get work on the parallel axis
    while tm > 8 and pl.cdiv(_round_up(M, 8), tm) < 2:
        tm = _round_up(tm // 2, 8)
    return max(tm, 8)


# ----------------------------- Pallas kernels ------------------------------

def _conv_bn_lif_kernel(x_ref, w_ref, bias_ref, o_ref, v_ref):
    # One (row-tile, timestep) grid point: conv-as-matmul (BN scale pre-folded
    # into w) + bias + one LIF step. Membrane persists across the T axis.
    @pl.when(pl.program_id(1) == 0)
    def _():
        v_ref[...] = jnp.zeros_like(v_ref)

    y = jnp.dot(x_ref[...], w_ref[...], preferred_element_type=jnp.float32)
    y = y + bias_ref[...]
    v = v_ref[...]
    h = v + (y - v) * (1.0 / TAU)          # decay_input=True, v_reset=0
    fired = h >= V_TH
    o_ref[...] = jnp.where(fired, 1.0, 0.0).astype(o_ref.dtype)
    v_ref[...] = jnp.where(fired, 0.0, h)  # hard reset


def proj3_conv_bn_lif(cols, w, bias, *, out_dtype=jnp.bfloat16):
    """cols: (T, M, K) bf16 im2col; w: (K, N) bf16 (BN folded); bias: (N,) f32."""
    T, M, K = cols.shape
    N = w.shape[1]
    budget = _vmem_budget()
    tm = _pick_tm(M, K, N, budget=budget)
    Mp = _round_up(M, tm)
    if Mp != M:
        cols = jnp.pad(cols, ((0, 0), (0, Mp - M), (0, 0)))
    out = pl.pallas_call(
        _conv_bn_lif_kernel,
        out_shape=jax.ShapeDtypeStruct((T, Mp, N), out_dtype),
        grid=(Mp // tm, T),
        in_specs=[
            pl.BlockSpec((None, tm, K), lambda i, t: (t, i, 0)),
            pl.BlockSpec((K, N), lambda i, t: (0, 0)),
            pl.BlockSpec((1, N), lambda i, t: (0, 0)),
        ],
        out_specs=pl.BlockSpec((None, tm, N), lambda i, t: (t, i, 0)),
        scratch_shapes=[pltpu.VMEM((tm, N), jnp.float32)],
        compiler_params=pltpu.CompilerParams(
            dimension_semantics=("parallel", "arbitrary"),
            vmem_limit_bytes=budget),
    )(cols, w, bias.reshape(1, N).astype(jnp.float32))
    return out[:, :M, :]


def _proj4_pool_res_kernel(c4_ref, w4_ref, b4_ref, xs_ref, wr_ref, br_ref,
                           o_ref, v4_ref, vr_ref, *, H, W):
    # Per (image, timestep): conv4-as-matmul + bias -> f32 (H*W, N), in-kernel
    # 3x3/s2/pad1 maxpool -> (H2*W2, N), proj4 LIF; plus residual 1x1/s2 conv +
    # bias + LIF; plus final add. Two membranes persist across the T axis.
    H2, W2 = H // 2, W // 2
    N = o_ref.shape[-1]

    @pl.when(pl.program_id(1) == 0)
    def _():
        v4_ref[...] = jnp.zeros_like(v4_ref)
        vr_ref[...] = jnp.zeros_like(vr_ref)

    # proj4 conv (im2col matmul, BN scale folded into w4) + bias
    y = jnp.dot(c4_ref[...], w4_ref[...], preferred_element_type=jnp.float32)
    y = y + b4_ref[...]                                   # (H*W, N) f32

    # 3x3 stride-2 pad-1 maxpool (rows then cols); pad value ~ -inf.
    neg = jnp.float32(-3.0e38)
    yr = y.reshape(H2, 2, W, N)
    pair_r = jnp.maximum(yr[:, 0], yr[:, 1])              # rows 2r / 2r+1
    odd_r = yr[:, 1]                                      # row 2r+1
    up = jnp.concatenate(
        [jnp.full((1, W, N), neg, jnp.float32), odd_r[:H2 - 1]], axis=0)
    rowmax = jnp.maximum(pair_r, up)                      # (H2, W, N)
    yc = rowmax.reshape(H2, W2, 2, N)
    pair_c = jnp.maximum(yc[:, :, 0], yc[:, :, 1])
    odd_c = yc[:, :, 1]
    left = jnp.concatenate(
        [jnp.full((H2, 1, N), neg, jnp.float32), odd_c[:, :W2 - 1]], axis=1)
    p4 = jnp.maximum(pair_c, left).reshape(H2 * W2, N)    # pooled conv4+BN, f32

    # proj4 LIF (after the pool, matching conv->bn->pool->lif in the reference)
    v4 = v4_ref[...]
    h4 = v4 + (p4 - v4) * (1.0 / TAU)
    f4 = h4 >= V_TH
    s4 = jnp.where(f4, 1.0, 0.0)
    v4_ref[...] = jnp.where(f4, 0.0, h4)

    # residual 1x1 stride-2 conv (strided gather done outside) + bias + LIF
    ypr = jnp.dot(xs_ref[...], wr_ref[...], preferred_element_type=jnp.float32)
    ypr = ypr + br_ref[...]
    vr = vr_ref[...]
    hr = vr + (ypr - vr) * (1.0 / TAU)
    fr = hr >= V_TH
    sr = jnp.where(fr, 1.0, 0.0)
    vr_ref[...] = jnp.where(fr, 0.0, hr)

    o_ref[...] = (s4 + sr).astype(o_ref.dtype)            # exactly {0, 1, 2}


def proj4_pool_res_merge(cols4, xs, w4, b4, wr, br, *, T, B, H, W,
                         out_dtype=jnp.bfloat16):
    """cols4: (T*B, H*W, K) bf16; xs: (T*B, H2*W2, N) bf16; weights BN-folded bf16."""
    TB, HW, K = cols4.shape
    N = w4.shape[1]
    M2 = (H // 2) * (W // 2)
    budget = _vmem_budget()
    kern = functools.partial(_proj4_pool_res_kernel, H=H, W=W)
    return pl.pallas_call(
        kern,
        out_shape=jax.ShapeDtypeStruct((TB, M2, N), out_dtype),
        grid=(B, T),
        in_specs=[
            pl.BlockSpec((None, HW, K), lambda b, t: (t * B + b, 0, 0)),
            pl.BlockSpec((K, N), lambda b, t: (0, 0)),
            pl.BlockSpec((1, N), lambda b, t: (0, 0)),
            pl.BlockSpec((None, M2, N), lambda b, t: (t * B + b, 0, 0)),
            pl.BlockSpec((N, N), lambda b, t: (0, 0)),
            pl.BlockSpec((1, N), lambda b, t: (0, 0)),
        ],
        out_specs=pl.BlockSpec((None, M2, N), lambda b, t: (t * B + b, 0, 0)),
        scratch_shapes=[pltpu.VMEM((M2, N), jnp.float32),
                        pltpu.VMEM((M2, N), jnp.float32)],
        compiler_params=pltpu.CompilerParams(
            dimension_semantics=("parallel", "arbitrary"),
            vmem_limit_bytes=budget),
    )(cols4, w4, b4.reshape(1, N).astype(jnp.float32),
      xs, wr, br.reshape(1, N).astype(jnp.float32))


# ------------------------------- JAX glue ----------------------------------

def im2col_3x3(x, kp):
    # x: (N, H, W, C) un-padded channels -> (N, H, W, kp); 3x3, stride 1, pad 1.
    n, h, w, c = x.shape
    xp = jnp.pad(x, ((0, 0), (1, 1), (1, 1), (0, 0)))
    taps = [xp[:, dy:dy + h, dx:dx + w, :] for dy in range(3) for dx in range(3)]
    cols = jnp.concatenate(taps, axis=-1)                  # (N, H, W, 9*C)
    if kp != 9 * c:
        cols = jnp.pad(cols, ((0, 0), (0, 0), (0, 0), (0, kp - 9 * c)))
    return cols


def bn_fold(gamma, beta, mean, var):
    scale = gamma / jnp.sqrt(var + BN_EPS)
    bias = beta - mean * scale
    return scale, bias


def _pad_vec(v, n):
    return jnp.zeros((n,), v.dtype).at[:v.shape[0]].set(v)


def _pack_conv3x3_weight(w, scale, kp, npad):
    # torch (Cout, Cin, 3, 3) -> (kp, npad) matmul weight with BN scale folded in.
    cout, cin = w.shape[0], w.shape[1]
    wt = jnp.transpose(w, (2, 3, 1, 0)).reshape(9 * cin, cout)   # (dy,dx,ci) x co
    wt = wt * scale[None, :]
    return jnp.zeros((kp, npad), wt.dtype).at[:9 * cin, :cout].set(wt)


def _pack_conv1x1_weight(w, scale, ep):
    cout, cin = w.shape[0], w.shape[1]
    wm = jnp.transpose(w[:, :, 0, 0], (1, 0)) * scale[None, :]   # (Cin, Cout)
    return jnp.zeros((ep, ep), wm.dtype).at[:cin, :cout].set(wm)


def init_params(key, embed_dims):
    E = embed_dims
    ks = jax.random.split(key, 6)

    def conv_w(k, cout, cin, kh, kw):
        fan_in = cin * kh * kw
        return jax.random.normal(k, (cout, cin, kh, kw), jnp.float32) * (2.0 / fan_in) ** 0.5

    def bn_p(k, c):
        k1, k2, k3, k4 = jax.random.split(k, 4)
        gamma = jax.random.uniform(k1, (c,), jnp.float32, 0.5, 1.5)
        beta = 0.1 * jax.random.normal(k2, (c,), jnp.float32)
        mean = 0.1 * jax.random.normal(k3, (c,), jnp.float32)
        var = jax.random.uniform(k4, (c,), jnp.float32, 0.5, 1.5)
        return (gamma, beta, mean, var)

    return {
        "proj3_conv_w": conv_w(ks[0], E, E, 3, 3),
        "proj3_bn": bn_p(ks[1], E),
        "proj4_conv_w": conv_w(ks[2], E, E, 3, 3),
        "proj4_bn": bn_p(ks[3], E),
        "proj_res_conv_w": conv_w(ks[4], E, E, 1, 1),
        "proj_res_bn": bn_p(ks[5], E),
    }


def patch_embedding_stage_forward(x, params):
    # x: (T, B, E, H, W) float32 (PyTorch layout). Returns (T, B, E, H//2, W//2) f32.
    T, B, C, H, W = x.shape
    E = params["proj3_conv_w"].shape[0]
    assert C == E, "module applies embed_dims->embed_dims convs directly to the input"
    assert H % 2 == 0 and W % 2 == 0 and H >= 4 and W >= 4
    Ep = _round_up(E, LANE)
    Kp = _round_up(9 * E, LANE)          # K-shrink: pad 9*E, not 9*Ep
    H2, W2 = H // 2, W // 2

    # channels-last bf16 activation; channels stay UN-padded for im2col
    x_cl = jnp.transpose(x, (0, 1, 3, 4, 2)).astype(jnp.bfloat16)   # (T, B, H, W, E)

    sc3, bi3 = bn_fold(*params["proj3_bn"])
    sc4, bi4 = bn_fold(*params["proj4_bn"])
    scr, bir = bn_fold(*params["proj_res_bn"])
    w3 = _pack_conv3x3_weight(params["proj3_conv_w"], sc3, Kp, Ep).astype(jnp.bfloat16)
    w4 = _pack_conv3x3_weight(params["proj4_conv_w"], sc4, Kp, Ep).astype(jnp.bfloat16)
    wr = _pack_conv1x1_weight(params["proj_res_conv_w"], scr, Ep).astype(jnp.bfloat16)
    bi3, bi4, bir = _pad_vec(bi3, Ep), _pad_vec(bi4, Ep), _pad_vec(bir, Ep)

    # kernel A: proj3_conv + proj3_bn + proj3_lif
    cols3 = im2col_3x3(x_cl.reshape(T * B, H, W, E), Kp).reshape(T, B * H * W, Kp)
    s3 = proj3_conv_bn_lif(cols3, w3, bi3)                 # (T, B*H*W, Ep) bf16 spikes

    # kernel B: proj4_conv+bn + 3x3/s2 maxpool + proj4_lif
    #           + residual 1x1/s2 conv+bn+lif + final add
    s3_img = s3[..., :E].reshape(T * B, H, W, E)           # padded spike channels are 0
    cols4 = im2col_3x3(s3_img, Kp).reshape(T * B, H * W, Kp)
    # TODO(synk): residual stride-2 gather is still an XLA strided slice in HBM;
    # an in-kernel strided DMA would remove one write+read of this tensor.
    xs = x_cl[:, :, ::2, ::2, :]
    if Ep != E:
        xs = jnp.pad(xs, ((0, 0),) * 4 + ((0, Ep - E),))
    xs = xs.reshape(T * B, H2 * W2, Ep)
    out = proj4_pool_res_merge(cols4, xs, w4, bi4, wr, bir, T=T, B=B, H=H, W=W)

    out = out[:, :, :E].reshape(T, B, H2, W2, E)           # bf16 {0,1,2}
    return jnp.transpose(out, (0, 1, 4, 2, 3)).astype(jnp.float32)


if __name__ == "__main__":
    key = jax.random.PRNGKey(0)
    T, B, E, H, W = 2, 2, 32, 8, 8       # small shapes; embed_dims=32, 8x8 feature map
    kx, kp = jax.random.split(key)
    x = jax.random.normal(kx, (T, B, E, H, W), jnp.float32)
    params = init_params(kp, E)

    fwd = jax.jit(patch_embedding_stage_forward)
    out = jax.block_until_ready(fwd(x, params))
    assert out.shape == (T, B, E, H // 2, W // 2), out.shape
    assert out.dtype == jnp.float32
    print("KERNEL_OK")
</pallas_src>

<mosaic_0001>
module attributes {stable_mosaic.version = 11 : i64} {
  func.func @_conv_bn_lif_kernel(%arg0: i32, %arg1: i32, %arg2: memref<1x64x384xbf16, #tpu.memory_space<vmem>>, %arg3: memref<384x128xbf16, #tpu.memory_space<vmem>>, %arg4: memref<1x128xf32, #tpu.memory_space<vmem>>, %arg5: memref<1x64x128xbf16, #tpu.memory_space<vmem>>, %arg6: memref<64x128xf32, #tpu.memory_space<vmem>>) attributes {dimension_semantics = [#tpu.dimension_semantics<parallel>, #tpu.dimension_semantics<arbitrary>], iteration_bounds = array<i64: 2, 2>, scalar_prefetch = 0 : i64, scratch_operands = 1 : i64, tpu.core_type = #tpu.core_type<tc>, window_params = [{transform_indices = @transform_0, window_bounds = array<i64: 1, 64, 384>}, {pipeline_mode = #tpu.pipeline_mode<synchronous>, transform_indices = @transform_1, window_bounds = array<i64: 384, 128>}, {pipeline_mode = #tpu.pipeline_mode<synchronous>, transform_indices = @transform_2, window_bounds = array<i64: 1, 128>}, {transform_indices = @transform_3, window_bounds = array<i64: 1, 64, 128>}]} {
    %c0_i32 = arith.constant 0 : i32
    %0 = arith.cmpi eq, %arg1, %c0_i32 : i32
    %1 = arith.extui %0 : i1 to i32
    %c0_i32_0 = arith.constant 0 : i32
    %2 = arith.cmpi ne, %1, %c0_i32_0 : i32
    scf.if %2 {
      %cst_19 = arith.constant 0.000000e+00 : f32
      %27 = vector.broadcast %cst_19 : f32 to vector<64x128xf32>
      %c0_20 = arith.constant 0 : index
      %c0_21 = arith.constant 0 : index
      %28 = vector.load %arg6[%c0_20, %c0_21] : memref<64x128xf32, #tpu.memory_space<vmem>>, vector<64x128xf32>
      tpu.vector_store %arg6[%c0_20, %c0_21], %27 {strides = array<i32>} : memref<64x128xf32, #tpu.memory_space<vmem>>, vector<64x128xf32>,
    } else {
    }
    %c0 = arith.constant 0 : index
    %c0_1 = arith.constant 0 : index
    %c0_2 = arith.constant 0 : index
    %3 = vector.load %arg2[%c0, %c0_1, %c0_2] : memref<1x64x384xbf16, #tpu.memory_space<vmem>>, vector<1x64x384xbf16>
    %4 = vector.shape_cast %3 : vector<1x64x384xbf16> to vector<64x384xbf16>
    %c0_3 = arith.constant 0 : index
    %c0_4 = arith.constant 0 : index
    %5 = vector.load %arg3[%c0_3, %c0_4] : memref<384x128xbf16, #tpu.memory_space<vmem>>, vector<384x128xbf16>
    %cst = arith.constant dense<0.000000e+00> : vector<64x128xf32>
    %6 = tpu.matmul %4, %5, %cst {dimension_numbers = #tpu.dot_dimension_numbers<[1], [0], [0], [1], [0, 0, 1, 1], [], []>} : vector<64x384xbf16>, vector<384x128xbf16>, vector<64x128xf32> -> vector<64x128xf32>
    %c0_5 = arith.constant 0 : index
    %c0_6 = arith.constant 0 : index
    %7 = vector.load %arg4[%c0_5, %c0_6] : memref<1x128xf32, #tpu.memory_space<vmem>>, vector<1x128xf32>
    %8 = vector.broadcast %7 : vector<1x128xf32> to vector<64x128xf32>
    %9 = arith.addf %6, %8 : vector<64x128xf32>
    %c0_7 = arith.constant 0 : index
    %c0_8 = arith.constant 0 : index
    %10 = vector.load %arg6[%c0_7, %c0_8] : memref<64x128xf32, #tpu.memory_space<vmem>>, vector<64x128xf32>
    %11 = arith.subf %9, %10 : vector<64x128xf32>
    %cst_9 = arith.constant 5.000000e-01 : f32
    %12 = vector.broadcast %cst_9 : f32 to vector<64x128xf32>
    %13 = arith.mulf %11, %12 : vector<64x128xf32>
    %14 = arith.addf %10, %13 : vector<64x128xf32>
    %cst_10 = arith.constant 1.000000e+00 : f32
    %15 = vector.broadcast %cst_10 : f32 to vector<64x128xf32>
    %16 = arith.cmpf oge, %14, %15 : vector<64x128xf32>
    %cst_11 = arith.constant 1.000000e+00 : f32
    %cst_12 = arith.constant 0.000000e+00 : f32
    %17 = vector.broadcast %cst_11 : f32 to vector<64x128xf32>
    %18 = vector.broadcast %cst_12 : f32 to vector<64x128xf32>
    %19 = arith.select %16, %17, %18 : vector<64x128xi1>, vector<64x128xf32>
    %20 = arith.truncf %19 : vector<64x128xf32> to vector<64x128xbf16>
    %c0_13 = arith.constant 0 : index
    %c0_14 = arith.constant 0 : index
    %c0_15 = arith.constant 0 : index
    %21 = vector.load %arg5[%c0_13, %c0_14, %c0_15] : memref<1x64x128xbf16, #tpu.memory_space<vmem>>, vector<1x64x128xbf16>
    %22 = vector.shape_cast %21 : vector<1x64x128xbf16> to vector<64x128xbf16>
    %23 = vector.shape_cast %20 : vector<64x128xbf16> to vector<1x64x128xbf16>
    tpu.vector_store %arg5[%c0_13, %c0_14, %c0_15], %23 {strides = array<i32>} : memref<1x64x128xbf16, #tpu.memory_space<vmem>>, vector<1x64x128xbf16>,
    %cst_16 = arith.constant 0.000000e+00 : f32
    %24 = vector.broadcast %cst_16 : f32 to vector<64x128xf32>
    %25 = arith.select %16, %24, %14 : vector<64x128xi1>, vector<64x128xf32>
    %c0_17 = arith.constant 0 : index
    %c0_18 = arith.constant 0 : index
    %26 = vector.load %arg6[%c0_17, %c0_18] : memref<64x128xf32, #tpu.memory_space<vmem>>, vector<64x128xf32>
    tpu.vector_store %arg6[%c0_17, %c0_18], %25 {strides = array<i32>} : memref<64x128xf32, #tpu.memory_space<vmem>>, vector<64x128xf32>,
    return
  }
  func.func @transform_0(%arg0: i32, %arg1: i32) -> (i32, i32, i32) {
    %c0_i32 = arith.constant 0 : i32
    %c0_i32_0 = arith.constant 0 : i32
    return %arg1, %arg0, %c0_i32 : i32, i32, i32
  }
  func.func @transform_1(%arg0: i32, %arg1: i32) -> (i32, i32) {
    %c0_i32 = arith.constant 0 : i32
    %c0_i32_0 = arith.constant 0 : i32
    %c0_i32_1 = arith.constant 0 : i32
    return %c0_i32, %c0_i32_0 : i32, i32
  }
  func.func @transform_2(%arg0: i32, %arg1: i32) -> (i32, i32) {
    %c0_i32 = arith.constant 0 : i32
    %c0_i32_0 = arith.constant 0 : i32
    %c0_i32_1 = arith.constant 0 : i32
    return %c0_i32, %c0_i32_0 : i32, i32
  }
  func.func @transform_3(%arg0: i32, %arg1: i32) -> (i32, i32, i32) {
    %c0_i32 = arith.constant 0 : i32
    %c0_i32_0 = arith.constant 0 : i32
    return %arg1, %arg0, %c0_i32 : i32, i32, i32
  }
}

module attributes {stable_mosaic.version = 11 : i64} {
  func.func @_proj4_pool_res_kernel(%arg0: i32, %arg1: i32, %arg2: memref<1x64x384xbf16, #tpu.memory_space<vmem>>, %arg3: memref<384x128xbf16, #tpu.memory_space<vmem>>, %arg4: memref<1x128xf32, #tpu.memory_space<vmem>>, %arg5: memref<1x16x128xbf16, #tpu.memory_space<vmem>>, %arg6: memref<128x128xbf16, #tpu.memory_space<vmem>>, %arg7: memref<1x128xf32, #tpu.memory_space<vmem>>, %arg8: memref<1x16x128xbf16, #tpu.memory_space<vmem>>, %arg9: memref<16x128xf32, #tpu.memory_space<vmem>>, %arg10: memref<16x128xf32, #tpu.memory_space<vmem>>) attributes {dimension_semantics = [#tpu.dimension_semantics<parallel>, #tpu.dimension_semantics<arbitrary>], iteration_bounds = array<i64: 2, 2>, scalar_prefetch = 0 : i64, scratch_operands = 2 : i64, tpu.core_type = #tpu.core_type<tc>, window_params = [{transform_indices = @transform_0, window_bounds = array<i64: 1, 64, 384>}, {pipeline_mode = #tpu.pipeline_mode<synchronous>, transform_indices = @transform_1, window_bounds = array<i64: 384, 128>}, {pipeline_mode = #tpu.pipeline_mode<synchronous>, transform_indices = @transform_2, window_bounds = array<i64: 1, 128>}, {transform_indices = @transform_3, window_bounds = array<i64: 1, 16, 128>}, {pipeline_mode = #tpu.pipeline_mode<synchronous>, transform_indices = @transform_4, window_bounds = array<i64: 128, 128>}, {pipeline_mode = #tpu.pipeline_mode<synchronous>, transform_indices = @transform_5, window_bounds = array<i64: 1, 128>}, {transform_indices = @transform_6, window_bounds = array<i64: 1, 16, 128>}]} {
    %c0_i32 = arith.constant 0 : i32
    %0 = arith.cmpi eq, %arg1, %c0_i32 : i32
    %1 = arith.extui %0 : i1 to i32
    %c0_i32_0 = arith.constant 0 : i32
    %2 = arith.cmpi ne, %1, %c0_i32_0 : i32
    scf.if %2 {
      %cst_38 = arith.constant 0.000000e+00 : f32
      %73 = vector.broadcast %cst_38 : f32 to vector<16x128xf32>
      %c0_39 = arith.constant 0 : index
      %c0_40 = arith.constant 0 : index
      %74 = vector.load %arg9[%c0_39, %c0_40] : memref<16x128xf32, #tpu.memory_space<vmem>>, vector<16x128xf32>
      tpu.vector_store %arg9[%c0_39, %c0_40], %73 {strides = array<i32>} : memref<16x128xf32, #tpu.memory_space<vmem>>, vector<16x128xf32>,
      %cst_41 = arith.constant 0.000000e+00 : f32
      %75 = vector.broadcast %cst_41 : f32 to vector<16x128xf32>
      %c0_42 = arith.constant 0 : index
      %c0_43 = arith.constant 0 : index
      %76 = vector.load %arg10[%c0_42, %c0_43] : memref<16x128xf32, #tpu.memory_space<vmem>>, vector<16x128xf32>
      tpu.vector_store %arg10[%c0_42, %c0_43], %75 {strides = array<i32>} : memref<16x128xf32, #tpu.memory_space<vmem>>, vector<16x128xf32>,
    } else {
    }
    %c0 = arith.constant 0 : index
    %c0_1 = arith.constant 0 : index
    %c0_2 = arith.constant 0 : index
    %3 = vector.load %arg2[%c0, %c0_1, %c0_2] : memref<1x64x384xbf16, #tpu.memory_space<vmem>>, vector<1x64x384xbf16>
    %4 = vector.shape_cast %3 : vector<1x64x384xbf16> to vector<64x384xbf16>
    %c0_3 = arith.constant 0 : index
    %c0_4 = arith.constant 0 : index
    %5 = vector.load %arg3[%c0_3, %c0_4] : memref<384x128xbf16, #tpu.memory_space<vmem>>, vector<384x128xbf16>
    %cst = arith.constant dense<0.000000e+00> : vector<64x128xf32>
    %6 = tpu.matmul %4, %5, %cst {dimension_numbers = #tpu.dot_dimension_numbers<[1], [0], [0], [1], [0, 0, 1, 1], [], []>} : vector<64x384xbf16>, vector<384x128xbf16>, vector<64x128xf32> -> vector<64x128xf32>
    %c0_5 = arith.constant 0 : index
    %c0_6 = arith.constant 0 : index
    %7 = vector.load %arg4[%c0_5, %c0_6] : memref<1x128xf32, #tpu.memory_space<vmem>>, vector<1x128xf32>
    %8 = vector.broadcast %7 : vector<1x128xf32> to vector<64x128xf32>
    %9 = arith.addf %6, %8 : vector<64x128xf32>
    %10 = vector.shape_cast %9 : vector<64x128xf32> to vector<4x2x8x128xf32>
    %11 = vector.extract_strided_slice %10 {offsets = [0, 0, 0, 0], sizes = [4, 1, 8, 128], strides = [1, 1, 1, 1]} : vector<4x2x8x128xf32> to vector<4x1x8x128xf32>
    %12 = vector.shape_cast %11 : vector<4x1x8x128xf32> to vector<4x8x128xf32>
    %13 = vector.extract_strided_slice %10 {offsets = [0, 1, 0, 0], sizes = [4, 1, 8, 128], strides = [1, 1, 1, 1]} : vector<4x2x8x128xf32> to vector<4x1x8x128xf32>
    %14 = vector.shape_cast %13 : vector<4x1x8x128xf32> to vector<4x8x128xf32>
    %15 = arith.maximumf %12, %14 : vector<4x8x128xf32>
    %16 = vector.extract_strided_slice %10 {offsets = [0, 1, 0, 0], sizes = [4, 1, 8, 128], strides = [1, 1, 1, 1]} : vector<4x2x8x128xf32> to vector<4x1x8x128xf32>
    %17 = vector.shape_cast %16 : vector<4x1x8x128xf32> to vector<4x8x128xf32>
    %cst_7 = arith.constant -3.000000e+38 : f32
    %18 = vector.broadcast %cst_7 : f32 to vector<1x8x128xf32>
    %19 = vector.extract_strided_slice %17 {offsets = [0, 0, 0], sizes = [3, 8, 128], strides = [1, 1, 1]} : vector<4x8x128xf32> to vector<3x8x128xf32>
    %20 = tpu.concatenate %18, %19 in 0 : vector<1x8x128xf32>, vector<3x8x128xf32> -> vector<4x8x128xf32>
    %21 = arith.maximumf %15, %20 : vector<4x8x128xf32>
    %22 = vector.shape_cast %21 : vector<4x8x128xf32> to vector<4x4x2x128xf32>
    %23 = vector.extract_strided_slice %22 {offsets = [0, 0, 0, 0], sizes = [4, 4, 1, 128], strides = [1, 1, 1, 1]} : vector<4x4x2x128xf32> to vector<4x4x1x128xf32>
    %24 = vector.shape_cast %23 : vector<4x4x1x128xf32> to vector<4x4x128xf32>
    %25 = vector.extract_strided_slice %22 {offsets = [0, 0, 1, 0], sizes = [4, 4, 1, 128], strides = [1, 1, 1, 1]} : vector<4x4x2x128xf32> to vector<4x4x1x128xf32>
    %26 = vector.shape_cast %25 : vector<4x4x1x128xf32> to vector<4x4x128xf32>
    %27 = arith.maximumf %24, %26 : vector<4x4x128xf32>
    %28 = vector.extract_strided_slice %22 {offsets = [0, 0, 1, 0], sizes = [4, 4, 1, 128], strides = [1, 1, 1, 1]} : vector<4x4x2x128xf32> to vector<4x4x1x128xf32>
    %29 = vector.shape_cast %28 : vector<4x4x1x128xf32> to vector<4x4x128xf32>
    %cst_8 = arith.constant -3.000000e+38 : f32
    %30 = vector.broadcast %cst_8 : f32 to vector<4x1x128xf32>
    %31 = vector.extract_strided_slice %29 {offsets = [0, 0, 0], sizes = [4, 3, 128], strides = [1, 1, 1]} : vector<4x4x128xf32> to vector<4x3x128xf32>
    %32 = tpu.concatenate %30, %31 in 1 : vector<4x1x128xf32>, vector<4x3x128xf32> -> vector<4x4x128xf32>
    %33 = arith.maximumf %27, %32 : vector<4x4x128xf32>
    %34 = vector.shape_cast %33 : vector<4x4x128xf32> to vector<16x128xf32>
    %c0_9 = arith.constant 0 : index
    %c0_10 = arith.constant 0 : index
    %35 = vector.load %arg9[%c0_9, %c0_10] : memref<16x128xf32, #tpu.memory_space<vmem>>, vector<16x128xf32>
    %36 = arith.subf %34, %35 : vector<16x128xf32>
    %cst_11 = arith.constant 5.000000e-01 : f32
    %37 = vector.broadcast %cst_11 : f32 to vector<16x128xf32>
    %38 = arith.mulf %36, %37 : vector<16x128xf32>
    %39 = arith.addf %35, %38 : vector<16x128xf32>
    %cst_12 = arith.constant 1.000000e+00 : f32
    %40 = vector.broadcast %cst_12 : f32 to vector<16x128xf32>
    %41 = arith.cmpf oge, %39, %40 : vector<16x128xf32>
    %cst_13 = arith.constant 1.000000e+00 : f32
    %cst_14 = arith.constant 0.000000e+00 : f32
    %42 = vector.broadcast %cst_13 : f32 to vector<16x128xf32>
    %43 = vector.broadcast %cst_14 : f32 to vector<16x128xf32>
    %44 = arith.select %41, %42, %43 : vector<16x128xi1>, vector<16x128xf32>
    %cst_15 = arith.constant 0.000000e+00 : f32
    %45 = vector.broadcast %cst_15 : f32 to vector<16x128xf32>
    %46 = arith.select %41, %45, %39 : vector<16x128xi1>, vector<16x128xf32>
    %c0_16 = arith.constant 0 : index
    %c0_17 = arith.constant 0 : index
    %47 = vector.load %arg9[%c0_16, %c0_17] : memref<16x128xf32, #tpu.memory_space<vmem>>, vector<16x128xf32>
    tpu.vector_store %arg9[%c0_16, %c0_17], %46 {strides = array<i32>} : memref<16x128xf32, #tpu.memory_space<vmem>>, vector<16x128xf32>,
    %c0_18 = arith.constant 0 : index
    %c0_19 = arith.constant 0 : index
    %c0_20 = arith.constant 0 : index
    %48 = vector.load %arg5[%c0_18, %c0_19, %c0_20] : memref<1x16x128xbf16, #tpu.memory_space<vmem>>, vector<1x16x128xbf16>
    %49 = vector.shape_cast %48 : vector<1x16x128xbf16> to vector<16x128xbf16>
    %c0_21 = arith.constant 0 : index
    %c0_22 = arith.constant 0 : index
    %50 = vector.load %arg6[%c0_21, %c0_22] : memref<128x128xbf16, #tpu.memory_space<vmem>>, vector<128x128xbf16>
    %cst_23 = arith.constant dense<0.000000e+00> : vector<16x128xf32>
    %51 = tpu.matmul %49, %50, %cst_23 {dimension_numbers = #tpu.dot_dimension_numbers<[1], [0], [0], [1], [0, 0, 1, 1], [], []>} : vector<16x128xbf16>, vector<128x128xbf16>, vector<16x128xf32> -> vector<16x128xf32>
    %c0_24 = arith.constant 0 : index
    %c0_25 = arith.constant 0 : index
    %52 = vector.load %arg7[%c0_24, %c0_25] : memref<1x128xf32, #tpu.memory_space<vmem>>, vector<1x128xf32>
    %53 = vector.broadcast %52 : vector<1x128xf32> to vector<16x128xf32>
    %54 = arith.addf %51, %53 : vector<16x128xf32>
    %c0_26 = arith.constant 0 : index
    %c0_27 = arith.constant 0 : index
    %55 = vector.load %arg10[%c0_26, %c0_27] : memref<16x128xf32, #tpu.memory_space<vmem>>, vector<16x128xf32>
    %56 = arith.subf %54, %55 : vector<16x128xf32>
    %cst_28 = arith.constant 5.000000e-01 : f32
    %57 = vector.broadcast %cst_28 : f32 to vector<16x128xf32>
    %58 = arith.mulf %56, %57 : vector<16x128xf32>
    %59 = arith.addf %55, %58 : vector<16x128xf32>
    %cst_29 = arith.constant 1.000000e+00 : f32
    %60 = vector.broadcast %cst_29 : f32 to vector<16x128xf32>
    %61 = arith.cmpf oge, %59, %60 : vector<16x128xf32>
    %cst_30 = arith.constant 1.000000e+00 : f32
    %cst_31 = arith.constant 0.000000e+00 : f32
    %62 = vector.broadcast %cst_30 : f32 to vector<16x128xf32>
    %63 = vector.broadcast %cst_31 : f32 to vector<16x128xf32>
    %64 = arith.select %61, %62, %63 : vector<16x128xi1>, vector<16x128xf32>
    %cst_32 = arith.constant 0.000000e+00 : f32
    %65 = vector.broadcast %cst_32 : f32 to vector<16x128xf32>
    %66 = arith.select %61, %65, %59 : vector<16x128xi1>, vector<16x128xf32>
    %c0_33 = arith.constant 0 : index
    %c0_34 = arith.constant 0 : index
    %67 = vector.load %arg10[%c0_33, %c0_34] : memref<16x128xf32, #tpu.memory_space<vmem>>, vector<16x128xf32>
    tpu.vector_store %arg10[%c0_33, %c0_34], %66 {strides = array<i32>} : memref<16x128xf32, #tpu.memory_space<vmem>>, vector<16x128xf32>,
    %68 = arith.addf %44, %64 : vector<16x128xf32>
    %69 = arith.truncf %68 : vector<16x128xf32> to vector<16x128xbf16>
    %c0_35 = arith.constant 0 : index
    %c0_36 = arith.constant 0 : index
    %c0_37 = arith.constant 0 : index
    %70 = vector.load %arg8[%c0_35, %c0_36, %c0_37] : memref<1x16x128xbf16, #tpu.memory_space<vmem>>, vector<1x16x128xbf16>
    %71 = vector.shape_cast %70 : vector<1x16x128xbf16> to vector<16x128xbf16>
    %72 = vector.shape_cast %69 : vector<16x128xbf16> to vector<1x16x128xbf16>
    tpu.vector_store %arg8[%c0_35, %c0_36, %c0_37], %72 {strides = array<i32>} : memref<1x16x128xbf16, #tpu.memory_space<vmem>>, vector<1x16x128xbf16>,
    return
  }
  func.func @transform_0(%arg0: i32, %arg1: i32) -> (i32, i32, i32) {
    %c2_i32 = arith.constant 2 : i32
    %0 = arith.muli %arg1, %c2_i32 : i32
    %1 = arith.addi %0, %arg0 : i32
    %c0_i32 = arith.constant 0 : i32
    %c0_i32_0 = arith.constant 0 : i32
    %c0_i32_1 = arith.constant 0 : i32
    return %1, %c0_i32, %c0_i32_0 : i32, i32, i32
  }
  func.func @transform_1(%arg0: i32, %arg1: i32) -> (i32, i32) {
    %c0_i32 = arith.constant 0 : i32
    %c0_i32_0 = arith.constant 0 : i32
    %c0_i32_1 = arith.constant 0 : i32
    return %c0_i32, %c0_i32_0 : i32, i32
  }
  func.func @transform_2(%arg0: i32, %arg1: i32) -> (i32, i32) {
    %c0_i32 = arith.constant 0 : i32
    %c0_i32_0 = arith.constant 0 : i32
    %c0_i32_1 = arith.constant 0 : i32
    return %c0_i32, %c0_i32_0 : i32, i32
  }
  func.func @transform_3(%arg0: i32, %arg1: i32) -> (i32, i32, i32) {
    %c2_i32 = arith.constant 2 : i32
    %0 = arith.muli %arg1, %c2_i32 : i32
    %1 = arith.addi %0, %arg0 : i32
    %c0_i32 = arith.constant 0 : i32
    %c0_i32_0 = arith.constant 0 : i32
    %c0_i32_1 = arith.constant 0 : i32
    return %1, %c0_i32, %c0_i32_0 : i32, i32, i32
  }
  func.func @transform_4(%arg0: i32, %arg1: i32) -> (i32, i32) {
    %c0_i32 = arith.constant 0 : i32
    %c0_i32_0 = arith.constant 0 : i32
    %c0_i32_1 = arith.constant 0 : i32
    return %c0_i32, %c0_i32_0 : i32, i32
  }
  func.func @transform_5(%arg0: i32, %arg1: i32) -> (i32, i32) {
    %c0_i32 = arith.constant 0 : i32
    %c0_i32_0 = arith.constant 0 : i32
    %c0_i32_1 = arith.constant 0 : i32
    return %c0_i32, %c0_i32_0 : i32, i32
  }
  func.func @transform_6(%arg0: i32, %arg1: i32) -> (i32, i32, i32) {
    %c2_i32 = arith.constant 2 : i32
    %0 = arith.muli %arg1, %c2_i32 : i32
    %1 = arith.addi %0, %arg0 : i32
    %c0_i32 = arith.constant 0 : i32
    %c0_i32_0 = arith.constant 0 : i32
    %c0_i32_1 = arith.constant 0 : i32
    return %1, %c0_i32, %c0_i32_0 : i32, i32, i32
  }
}

</mosaic_0001>

<bundles_post_ra>
// kernel: patch_embedding_stage_forward.2
= control target key start
LH: loop header
LB: loop body
LE: loop exit
PB: predicated region body
PF: predicated region fallthrough
CT: control target
= control target key end

     0   :  { %s1135_s12 = smov 0   ;;  %s1137_s13 = smov 0   ;;  %s1310_s0 = inlined_call_operand.vmem [shape: bf16[2,128,384], index: 0, kind: input, shape index: {}]   ;;  %s1311_s1 = inlined_call_operand.vmem [shape: bf16[384,128], index: 1, kind: input, shape index: {}]   ;;  %s1312_s2 = inlined_call_operand.vmem [shape: f32[1,128], index: 2, kind: input, shape index: {}]   ;;  %s1313_s3 = inlined_call_operand.vmem [shape: bf16[2,128,128], index: 3, kind: output, shape index: {}]  }
   0x1   :  { %s1139_s14 = smov 0   ;;  %s1141_s15 = smov 0  }
   0x2   :  { %s1143_s16 = smov 0  }
   0x3 LB: > { %s22_s17 = sadd.s32 1, %s1103_s14  ;;  %s25_s18 = sadd.s32 1, %s1107_s15  ;;  %s1111_s16 = sphi %s1143_s16, %s13_s16   ;;  %s1107_s15 = sphi %s1141_s15, %s1317_s15   ;;  %s1103_s14 = sphi %s1139_s14, %s1316_s14   ;;  %s1099_s13 = sphi %s1137_s13, %s1315_s13   ;;  %s1095_s12 = sphi %s1135_s12, %s1314_s12  }
   0x4   : > { %p23_p0 = scmp.ge.s32.totalorder %s22_s17, 2  ;;  %p836_p1 = scmp.ge.s32.totalorder %s1111_s16, 1 }
   0x5   : > { %p159_p2 = scmp.lt.s32.totalorder %s1111_s16, 5 }
   0x6   : > { %s1319_s17 = smov (%p23_p0, %s22_s17), 0  ;;  %s1321_s18 = smov (!%p23_p0, %s25_s18), %s1107_s15 }
   0x7   : > { %p160_p3 = pnand %p836_p1, %p159_p2  ;;  %p27_p4 = scmp.ge.s32.totalorder %s1321_s18, 2 }
   0x8   : > { %s837_s19 = sshll.u32 (!%p160_p3), %s1099_s13, 3  ;;  %p193_p5 = scmp.lt.s32.totalorder (!%p160_p3), %s1095_s12, 1 }
   0x9   : > { %s1323_s18 = smov (%p27_p4, %s1321_s18), 0  ;;  %163 = sbr.rel (%p160_p3) target bundleno = 313 (0x139), region = 32 }
   0xa   : > { %p195_p6 = scmp.lt.s32.totalorder (!%p160_p3), %s837_s19, 15  ;;  %p842_p7 = scmp.ne.s32.totalorder (!%p160_p3), %s1095_s12, 0 }
  0x10   : > { %s194_s20 = scalar_select %p193_p5, %s1095_s12, 1 }
  0x11   : > { %s1325_s19 = smov (!%p195_p6, %s837_s19), 15  ;;  %217 = sbr.rel (%p842_p7) target bundleno = 24 (0x18), region = 36 }
  0x12   : > { %s990_s21 = smul.u32 48, %s194_s20  ;;  %s840_s22 = sshll.u32 %s194_s20, 4  ;;  %v1113_v0 = vmov (!%p842_p7), 0.0  }
  0x13   : > { %s989_s23 = smul.u32 3, %s1325_s19  ;;  %s209_s24 = sadd.s32 %s840_s22, %s1325_s19  ;;  %218 = vst [vmem:[#allocation2] sm:$0xff] (!%p842_p7), %v1113_v0  ;;  %219 = vst [vmem:[#allocation2 + $0x8] sm:$0xff] (!%p842_p7), %v1113_v0 }
  0x14   : > { %s841_s25 = sshll.u32 %s209_s24, 2  ;;  %220 = vst [vmem:[#allocation2 + $0x10] sm:$0xff] (!%p842_p7), %v1113_v0  ;;  %221 = vst [vmem:[#allocation2 + $0x18] sm:$0xff] (!%p842_p7), %v1113_v0 }
  0x15   : > { %s199_s26 = sadd.s32 %s990_s21, %s989_s23  ;;  %s1172_s29 = scalar_lea.vmem %s1313_s3, %s841_s25  ;;  %222 = vst [vmem:[#allocation2 + $0x20] sm:$0xff] (!%p842_p7), %v1113_v0  ;;  %223 = vst [vmem:[#allocation2 + $0x28] sm:$0xff] (!%p842_p7), %v1113_v0 }
  0x16   : > { %s838_s30 = sshll.u32 %s199_s26, 2  ;;  %224 = vst [vmem:[#allocation2 + $0x30] sm:$0xff] (!%p842_p7), %v1113_v0  ;;  %225 = vst [vmem:[#allocation2 + $0x38] sm:$0xff] (!%p842_p7), %v1113_v0 }
  0x17   : > { %s1177_s6 = scalar_lea.vmem %s1310_s0, %s838_s30 }
  0x18 PF: > { %v1033_v1 = vld [vmem:[%s1311_s1 + $0x40] sm:$0xff]   ;;  %v1035_v3 = vld [vmem:[%s1311_s1 + $0x48] sm:$0xff]   ;;  %v1038_v6 = vld [vmem:[%s1311_s1 + $0x50] sm:$0xff]  }
  0x19   : > { %v1034_v2 = vld [vmem:[%s1311_s1] sm:$0xff]   ;;  %913 = vmatprep.subr.bf16.mxu0 %v1033_v1  ;;  %v1037_v5 = vld [vmem:[%s1311_s1 + $0x8] sm:$0xff]   ;;  %v1040_v8 = vld [vmem:[%s1311_s1 + $0x10] sm:$0xff]  }
  0x1a   : > { %914 = vmatpush3.bf16.msra.mxu0 %v1034_v2  ;;  %v1036_v4 = vld [vmem:[%s1311_s1 + $0x80] sm:$0xff]   ;;  %v1039_v7 = vld [vmem:[%s1311_s1 + $0x88] sm:$0xff]   ;;  %v1041_v9 = vld [vmem:[%s1311_s1 + $0x58] sm:$0xff]  }
  0x1b   : > { %915 = vmatprep.subr.bf16.mxu0 %v1035_v3  ;;  %965 = vmatprep.subr.bf16.mxu1 %v1036_v4  ;;  %v1042_v10 = vld [vmem:[%s1311_s1 + $0x90] sm:$0xff]   ;;  %v1043_v11 = vld [vmem:[%s1311_s1 + $0x18] sm:$0xff]   ;;  %v1044_v12 = vld [vmem:[%s1311_s1 + $0x60] sm:$0xff]  }
  0x1c   : > { %966 = vmatpush3.bf16.msra.mxu1 %v1036_v4  ;;  %v1045_v13 = vld [vmem:[%s1311_s1 + $0x98] sm:$0xff]   ;;  %v1046_v14 = vld [vmem:[%s1311_s1 + $0x20] sm:$0xff]   ;;  %v1047_v16 = vld [vmem:[%s1311_s1 + $0x68] sm:$0xff]  }
  0x1d   : > { %967 = vmatprep.subr.bf16.mxu1 %v1039_v7  ;;  %v1048_v15 = vld [vmem:[%s1311_s1 + $0xa0] sm:$0xff]   ;;  %v1049_v17 = vld [vmem:[%s1311_s1 + $0x28] sm:$0xff]   ;;  %v1050_v19 = vld [vmem:[%s1311_s1 + $0x70] sm:$0xff]  }
  0x1e   : > { %916 = vmatpush3.bf16.msra.mxu0 %v1037_v5  ;;  %v1051_v18 = vld [vmem:[%s1311_s1 + $0xa8] sm:$0xff]   ;;  %v1052_v20 = vld [vmem:[%s1311_s1 + $0x30] sm:$0xff]   ;;  %v1053_v21 = vld [vmem:[%s1311_s1 + $0x78] sm:$0xff]  }
  0x1f   : > { %917 = vmatprep.subr.bf16.mxu0 %v1038_v6  ;;  %v1054_v22 = vld [vmem:[%s1311_s1 + $0xb0] sm:$0xff]   ;;  %v1055_v24 = vld [vmem:[%s1311_s1 + $0x38] sm:$0xff]   ;;  %v1056_v27 = vld [vmem:[%s1177_s6] ss:$12 sps:$4 sm:$0xff]  }
  0x20   : > { %968 = vmatpush3.bf16.msra.mxu1 %v1039_v7  ;;  %v1058_v23 = vld [vmem:[%s1177_s6 + $0x4] ss:$12 sps:$4 sm:$0xff]   ;;  %v1060_v25 = vld [vmem:[%s1177_s6 + $0x8] ss:$12 sps:$4 sm:$0xff]   ;;  %v1059_v26 = vld [vmem:[%s1311_s1 + $0xb8] sm:$0xff]  }
  0x21   : > { %969 = vmatprep.subr.bf16.mxu1 %v1042_v10  ;;  %537 = vmatprep.mubr.bf16.mxu0 %v1058_v23  ;;  %v1062_v28 = vld [vmem:[%s1177_s6 + $0x1c] ss:$12 sps:$4 sm:$0xff]   ;;  %v1061_v29 = vld [vmem:[%s1177_s6 + $0x20] ss:$12 sps:$4 sm:$0xff]   ;;  %v1068_v30 = vld [vmem:[%s1177_s6 + $0x38] ss:$12 sps:$4 sm:$0xff]  }
  0x22   : > { %918 = vmatpush3.bf16.msra.mxu0 %v1040_v8  ;;  %981 = vmatprep.mubr.bf16.mxu1 %v1060_v25  ;;  %v1064_v31 = vld [vmem:[%s1177_s6 + $0x18] ss:$12 sps:$4 sm:$0xff]   ;;  %v1065_v32 = vld [vmem:[%s1177_s6 + $0x34] ss:$12 sps:$4 sm:$0xff]   ;;  %v1069_v33 = vld [vmem:[%s1177_s6 + $0x50] ss:$12 sps:$4 sm:$0xff]  }
  0x23   : > { %919 = vmatprep.subr.bf16.mxu0 %v1041_v9  ;;  %v1067_v34 = vld [vmem:[%s1177_s6 + $0x30] ss:$12 sps:$4 sm:$0xff]   ;;  %v1070_v35 = vld [vmem:[%s1177_s6 + $0x4c] ss:$12 sps:$4 sm:$0xff]   ;;  %v1072_v36 = vld [vmem:[%s1177_s6 + $0x48] ss:$12 sps:$4 sm:$0xff]  }
  0x24   : > { %970 = vmatpush3.bf16.msra.mxu1 %v1042_v10  ;;  %v1267_v39 = vld [vmem:[%s1312_s2] ss:$0 sm:$0xff]  ;;  %v636_v52 = vld [vmem:[#allocation2 + $0x8] sm:$0xff]  ;;  %v637_v4 = vld [vmem:[#allocation2 + $0x10] sm:$0xff] }
  0x25   : > { %971 = vmatprep.subr.bf16.mxu1 %v1045_v13  ;;  %v635_v47 = vld [vmem:[#allocation2] sm:$0xff] }
  0x26   : > { %920 = vmatpush3.bf16.msra.mxu0 %v1043_v11  ;;  %v638_v11 = vld [vmem:[#allocation2 + $0x18] sm:$0xff] }
  0x27   : > { %921 = vmatprep.subr.bf16.mxu0 %v1044_v12 }
  0x28   : > { %972 = vmatpush3.bf16.msra.mxu1 %v1045_v13 }
  0x29   : > { %973 = vmatprep.subr.bf16.mxu1 %v1048_v15 }
  0x2a   : > { %922 = vmatpush3.bf16.msra.mxu0 %v1046_v14 }
  0x2b   : > { %923 = vmatprep.subr.bf16.mxu0 %v1047_v16 }
  0x2c   : > { %974 = vmatpush3.bf16.msra.mxu1 %v1048_v15  ;;  %v1114_v15 = vmov 0.0  }
  0x2d   : > { %975 = vmatprep.subr.bf16.mxu1 %v1051_v18 }
  0x2e   : > { %924 = vmatpush3.bf16.msra.mxu0 %v1049_v17 }
  0x2f   : > { %925 = vmatprep.subr.bf16.mxu0 %v1050_v19 }
  0x30   : > { %976 = vmatpush3.bf16.msra.mxu1 %v1051_v18 }
  0x31   : > { %977 = vmatprep.subr.bf16.mxu1 %v1054_v22 }
  0x32   : > { %926 = vmatpush3.bf16.msra.mxu0 %v1052_v20 }
  0x33   : > { %927 = vmatprep.subr.bf16.mxu0 %v1053_v21 }
  0x34   : > { %978 = vmatpush3.bf16.msra.mxu1 %v1054_v22 }
  0x35   : > { %979 = vmatprep.subr.bf16.mxu1 %v1059_v26 }
  0x36   : > { %928 = vmatpush3.bf16.msra.mxu0 %v1055_v24 }
  0x38   : > { %980 = vmatpush3.bf16.msra.mxu1 %v1059_v26 }
  0x39   : > { %538 = vmatmul.mubr.bf16.vlgmr.msra.gmra.mrb[0].mxu0 %v1056_v27 }
  0x3a   : > { %545 = vmatprep.mubr.bf16.mxu0 %v1062_v28 }
  0x3b   : > { %982 = vmatmul.mubr.bf16.vlgmr.msra.gmra.mrb[0].mxu1 %v1061_v29 }
  0x3c   : > { %985 = vmatprep.mubr.bf16.mxu1 %v1068_v30  ;;  %v639_v30 = vld [vmem:[#allocation2 + $0x20] sm:$0xff] }
  0x41   : > { %546 = vmatmul.mubr.bf16.gmra.mrb[4].mxu0 %v1064_v31 }
  0x42   : > { %553 = vmatprep.mubr.bf16.mxu0 %v1065_v32 }
  0x43   : > { %986 = vmatmul.mubr.bf16.gmra.mrb[4].mxu1 %v1069_v33 }
  0x49   : > { %554 = vmatmul.mubr.bf16.gmra.mrb[8].mxu0 %v1067_v34 }
  0x4a   : > { %561 = vmatprep.mubr.bf16.mxu0 %v1070_v35  ;;  %v640_v35 = vld [vmem:[#allocation2 + $0x28] sm:$0xff] }
  0x51   : > { %562 = vmatmul.mubr.bf16.gmra.mrb[12].mxu0 %v1072_v36 }
 0x10c   : > { %v929_v37 = vpop.f32.mrb[0].mxu0 }
 0x10d   : > { %v930_v38 = vpop.f32.mrb[1].mxu0 }
 0x10e   : > { %v931_v40 = vadd.f32 %v930_v38, %v929_v37  ;;  %v932_v41 = vpop.f32.mrb[2].mxu0  ;;  %v983_v43 = vpop.f32.mrb[0].mxu1 }
 0x10f   : > { %v933_v42 = vpop.f32.mrb[3].mxu0  ;;  %v604_v46 = vpop.f32.mrb[1].mxu1 }
 0x110   : > { %v934_v44 = vadd.f32 %v933_v42, %v932_v41  ;;  %v540_v45 = vadd.f32 %v931_v40, %v1267_v39  ;;  %v984_v48 = vpop.f32.mrb[2].mxu1 }
 0x111   : > { %v607_v51 = vpop.f32.mrb[3].mxu1 }
 0x112   : > { %v605_v49 = vadd.f32 %v604_v46, %v540_v45  ;;  %v543_v50 = vadd.f32 %v934_v44, %v1267_v39 }
 0x114   : > { %v643_v53 = vsub.f32 %v605_v49, %v635_v47  ;;  %v608_v54 = vadd.f32 %v607_v51, %v543_v50  ;;  %v935_v55 = vpop.f32.mrb[4].mxu0 }
 0x115   : > { %v936_v56 = vpop.f32.mrb[5].mxu0 }
 0x116   : > { %v651_v57 = vmul.f32 0.5, %v643_v53  ;;  %v644_v58 = vsub.f32 %v608_v54, %v636_v52  ;;  %v937_v59 = vadd.f32 %v936_v56, %v935_v55  ;;  %v938_v60 = vpop.f32.mrb[6].mxu0  ;;  %v1271_v62 = vpop.f32.mrb[4].mxu1  ;;  %v641_v54 = vld [vmem:[#allocation2 + $0x30] sm:$0xff] }
 0x117   : > { %v939_v61 = vpop.f32.mrb[7].mxu0  ;;  %v620_v3 = vpop.f32.mrb[5].mxu1 }
 0x118   : > { %v659_v63 = vadd.f32 %v651_v57, %v635_v47  ;;  %v652_v0 = vmul.f32 0.5, %v644_v58  ;;  %v548_v1 = vadd.f32 %v937_v59, %v1267_v39  ;;  %v940_v2 = vadd.f32 %v939_v61, %v938_v60  ;;  %v1274_v5 = vpop.f32.mrb[6].mxu1  ;;  %v642_v59 = vld [vmem:[#allocation2 + $0x38] sm:$0xff] }
 0x119   : > { %v623_v9 = vpop.f32.mrb[7].mxu1 }
 0x11a   : > { %vm667_vm0 = vcmp.ge.f32.partialorder %v659_v63, 1.0  ;;  %v660_v6 = vadd.f32 %v652_v0, %v636_v52  ;;  %v613_v7 = vadd.f32 %v983_v43, %v548_v1  ;;  %v551_v8 = vadd.f32 %v940_v2, %v1267_v39 }
 0x11b   : > { %v723_v10 = vsel %vm667_vm0, 0.0, %v659_v63  ;;  %v675_v16 = vsel %vm667_vm0, 1.0, %v1114_v15 }
 0x11c   : > { %731 = vst [vmem:[#allocation2] sm:$0xff] %v723_v10  ;;  %vm668_vm1 = vcmp.ge.f32.partialorder %v660_v6, 1.0  ;;  %v645_v12 = vsub.f32 %v613_v7, %v637_v4  ;;  %v616_v13 = vadd.f32 %v984_v48, %v551_v8  ;;  %v941_v14 = vpop.f32.mrb[8].mxu0 }
 0x11d   : > { %v676_v17 = vsel %vm668_vm1, 1.0, %v1114_v15  ;;  %v724_v18 = vsel %vm668_vm1, 0.0, %v660_v6  ;;  %v942_v19 = vpop.f32.mrb[9].mxu0 }
 0x11e   : > { %v899_v20 = vpack.c.bf16 %v676_v17, %v675_v16  ;;  %732 = vst [vmem:[#allocation2 + $0x8] sm:$0xff] %v724_v18  ;;  %v653_v21 = vmul.f32 0.5, %v645_v12  ;;  %v646_v22 = vsub.f32 %v616_v13, %v638_v11  ;;  %v943_v23 = vadd.f32 %v942_v19, %v941_v14  ;;  %v944_v24 = vpop.f32.mrb[10].mxu0 }
 0x11f   : > { %v945_v25 = vpop.f32.mrb[11].mxu0 }
 0x120   : > { %900 = vst [vmem:[%s1172_s29] sm:$0xff] %v899_v20   ;;  %v661_v26 = vadd.f32 %v653_v21, %v637_v4  ;;  %v654_v27 = vmul.f32 0.5, %v646_v22  ;;  %v946_v28 = vadd.f32 %v945_v25, %v944_v24  ;;  %v556_v29 = vadd.f32 %v943_v23, %v1267_v39 }
 0x122   : > { %vm669_vm2 = vcmp.ge.f32.partialorder %v661_v26, 1.0  ;;  %v662_v31 = vadd.f32 %v654_v27, %v638_v11  ;;  %v621_v32 = vadd.f32 %v620_v3, %v556_v29  ;;  %v559_v33 = vadd.f32 %v946_v28, %v1267_v39 }
 0x123   : > { %v725_v34 = vsel %vm669_vm2, 0.0, %v661_v26  ;;  %v677_v40 = vsel %vm669_vm2, 1.0, %v1114_v15 }
 0x124   : > { %733 = vst [vmem:[#allocation2 + $0x10] sm:$0xff] %v725_v34  ;;  %vm670_vm3 = vcmp.ge.f32.partialorder %v662_v31, 1.0  ;;  %v647_v36 = vsub.f32 %v621_v32, %v639_v30  ;;  %v624_v37 = vadd.f32 %v623_v9, %v559_v33  ;;  %v947_v38 = vpop.f32.mrb[12].mxu0 }
 0x125   : > { %v678_v41 = vsel %vm670_vm3, 1.0, %v1114_v15  ;;  %v726_v42 = vsel %vm670_vm3, 0.0, %v662_v31  ;;  %v948_v43 = vpop.f32.mrb[13].mxu0 }
 0x126   : > { %v902_v44 = vpack.c.bf16 %v678_v41, %v677_v40  ;;  %734 = vst [vmem:[#allocation2 + $0x18] sm:$0xff] %v726_v42  ;;  %v655_v45 = vmul.f32 0.5, %v647_v36  ;;  %v648_v46 = vsub.f32 %v624_v37, %v640_v35  ;;  %v949_v47 = vadd.f32 %v948_v43, %v947_v38  ;;  %v950_v48 = vpop.f32.mrb[14].mxu0 }
 0x127   : > { %v951_v49 = vpop.f32.mrb[15].mxu0 }
 0x128   : > { %910 = vst [vmem:[%s1172_s29 + $0x8] sm:$0xff] %v902_v44   ;;  %v663_v50 = vadd.f32 %v655_v45, %v639_v30  ;;  %v656_v51 = vmul.f32 0.5, %v648_v46  ;;  %v564_v52 = vadd.f32 %v949_v47, %v1267_v39  ;;  %v952_v53 = vadd.f32 %v951_v49, %v950_v48 }
 0x12a   : > { %vm671_vm4 = vcmp.ge.f32.partialorder %v663_v50, 1.0  ;;  %v664_v55 = vadd.f32 %v656_v51, %v640_v35  ;;  %v629_v56 = vadd.f32 %v1271_v62, %v564_v52  ;;  %v567_v57 = vadd.f32 %v952_v53, %v1267_v39 }
 0x12b   : > { %v727_v58 = vsel %vm671_vm4, 0.0, %v663_v50  ;;  %v679_v63 = vsel %vm671_vm4, 1.0, %v1114_v15 }
 0x12c   : > { %735 = vst [vmem:[#allocation2 + $0x20] sm:$0xff] %v727_v58  ;;  %vm672_vm5 = vcmp.ge.f32.partialorder %v664_v55, 1.0  ;;  %v649_v60 = vsub.f32 %v629_v56, %v641_v54  ;;  %v632_v61 = vadd.f32 %v1274_v5, %v567_v57 }
 0x12d   : > { %v680_v0 = vsel %vm672_vm5, 1.0, %v1114_v15  ;;  %v728_v1 = vsel %vm672_vm5, 0.0, %v664_v55 }
 0x12e   : > { %v905_v2 = vpack.c.bf16 %v680_v0, %v679_v63  ;;  %736 = vst [vmem:[#allocation2 + $0x28] sm:$0xff] %v728_v1  ;;  %v657_v3 = vmul.f32 0.5, %v649_v60  ;;  %v650_v4 = vsub.f32 %v632_v61, %v642_v59 }
 0x130   : > { %911 = vst [vmem:[%s1172_s29 + $0x10] sm:$0xff] %v905_v2   ;;  %v665_v62 = vadd.f32 %v657_v3, %v641_v54  ;;  %v658_v39 = vmul.f32 0.5, %v650_v4 }
 0x132   : > { %vm673_vm6 = vcmp.ge.f32.partialorder %v665_v62, 1.0  ;;  %v666_v6 = vadd.f32 %v658_v39, %v642_v59 }
 0x133   : > { %v729_v7 = vsel %vm673_vm6, 0.0, %v665_v62  ;;  %v681_v5 = vsel %vm673_vm6, 1.0, %v1114_v15 }
 0x134   : > { %737 = vst [vmem:[#allocation2 + $0x30] sm:$0xff] %v729_v7  ;;  %vm674_vm7 = vcmp.ge.f32.partialorder %v666_v6, 1.0 }
 0x135   : > { %v682_v8 = vsel %vm674_vm7, 1.0, %v1114_v15  ;;  %v730_v9 = vsel %vm674_vm7, 0.0, %v666_v6 }
 0x136   : > { %v908_v10 = vpack.c.bf16 %v682_v8, %v681_v5  ;;  %738 = vst [vmem:[#allocation2 + $0x38] sm:$0xff] %v730_v9 }
 0x138   : > { %912 = vst [vmem:[%s1172_s29 + $0x18] sm:$0xff] %v908_v10  }
 0x139 PF: > { %s13_s16 = sadd.s32 1, %s1111_s16   ;;  %s1314_s12 = smov %s1103_s14 }
 0x13a   : > { %p10_p8 = scmp.ge.s32.totalorder %s13_s16, 6   ;;  %s1315_s13 = smov %s1107_s15 }
 0x13b   : > { %s1316_s14 = smov %s1319_s17  ;;  %s1317_s15 = smov %s1323_s18 }
 0x13c   :  { %12 = sbr.rel (!%p10_p8) target bundleno = 3 (0x3), region = 66 }

// kernel: patch_embedding_stage_forward.3
= control target key start
LH: loop header
LB: loop body
LE: loop exit
PB: predicated region body
PF: predicated region fallthrough
CT: control target
= control target key end

     0   :  { %s1857_s21 = smov 0   ;;  %s1859_s22 = smov 0   ;;  %s2214_s0 = inlined_call_operand.vmem [shape: bf16[4,64,384], index: 0, kind: input, shape index: {}]   ;;  %s2215_s1 = inlined_call_operand.vmem [shape: bf16[384,128], index: 1, kind: input, shape index: {}]   ;;  %s2216_s2 = inlined_call_operand.vmem [shape: f32[1,128], index: 2, kind: input, shape index: {}]   ;;  %s2217_s3 = inlined_call_operand.vmem [shape: bf16[4,16,128], index: 3, kind: input, shape index: {}]   ;;  %s2218_s4 = inlined_call_operand.vmem [shape: bf16[128,128], index: 4, kind: input, shape index: {}]   ;;  %s2219_s5 = inlined_call_operand.vmem [shape: f32[1,128], index: 5, kind: input, shape index: {}]   ;;  %s2220_s6 = inlined_call_operand.vmem [shape: bf16[4,16,128], index: 6, kind: output, shape index: {}]  }
   0x1   :  { %s1861_s23 = smov 0   ;;  %s1863_s24 = smov 0  }
   0x2   :  { %s1865_s25 = smov 0  }
   0x3 LB: > { %s25_s26 = sadd.s32 1, %s1808_s23  ;;  %s28_s27 = sadd.s32 1, %s1812_s24  ;;  %s1816_s25 = sphi %s1865_s25, %s16_s25   ;;  %s1812_s24 = sphi %s1863_s24, %s2224_s24   ;;  %s1808_s23 = sphi %s1861_s23, %s2223_s23   ;;  %s1804_s22 = sphi %s1859_s22, %s2222_s22   ;;  %s1800_s21 = sphi %s1857_s21, %s2221_s21  }
   0x4   : > { %p26_p0 = scmp.ge.s32.totalorder %s25_s26, 2  ;;  %p1491_p1 = scmp.ge.s32.totalorder %s1816_s25, 1 }
   0x5   : > { %p254_p2 = scmp.lt.s32.totalorder %s1816_s25, 5 }
   0x6   : > { %s2226_s26 = smov (%p26_p0, %s25_s26), 0  ;;  %s2228_s27 = smov (!%p26_p0, %s28_s27), %s1812_s24 }
   0x7   : > { %p255_p3 = pnand %p1491_p1, %p254_p2  ;;  %p30_p4 = scmp.ge.s32.totalorder %s2228_s27, 2 }
   0x8   : > { %s1492_s28 = sshll.u32 (!%p255_p3), %s1800_s21, 1  ;;  %p1500_p6 = scmp.ne.s32.totalorder (!%p255_p3), %s1800_s21, 0 }
   0x9   : > { %s2230_s27 = smov (%p30_p4, %s2228_s27), 0  ;;  %258 = sbr.rel (%p255_p3) target bundleno = 350 (0x15e), region = 44 }
   0xa   : > { %s296_s29 = sadd.s32 (!%p255_p3), %s1804_s22, %s1492_s28 }
   0xb   : > { %p297_p5 = scmp.lt.s32.totalorder (!%p255_p3), %s296_s29, 3 }
  0x10   : > { %s2232_s29 = smov (!%p297_p5, %s296_s29), 3  ;;  %326 = sbr.rel (%p1500_p6) target bundleno = 23 (0x17), region = 48 }
  0x11   : > { %s1682_s30 = smul.u32 96, %s2232_s29  ;;  %s1568_s7 = sshll.u32 %s2232_s29, 3  ;;  %v1818_v0 = vmov (!%p1500_p6), 0.0  }
  0x12   : > { %s1890_s10 = scalar_lea.vmem %s2217_s3, %s1568_s7  ;;  %s1895_s13 = scalar_lea.vmem %s2220_s6, %s1568_s7  ;;  %327 = vst [vmem:[#allocation2] sm:$0xff] (!%p1500_p6), %v1818_v0  ;;  %328 = vst [vmem:[#allocation2 + $0x8] sm:$0xff] (!%p1500_p6), %v1818_v0 }
  0x13   : > { %s1900_s16 = scalar_lea.vmem %s2214_s0, %s1682_s30  ;;  %329 = vst [vmem:[#allocation3] sm:$0xff] (!%p1500_p6), %v1818_v0  ;;  %330 = vst [vmem:[#allocation3 + $0x8] sm:$0xff] (!%p1500_p6), %v1818_v0 }
  0x17 PF: > { %v1727_v1 = vld [vmem:[%s2215_s1 + $0x40] sm:$0xff]   ;;  %v1729_v3 = vld [vmem:[%s2215_s1 + $0x48] sm:$0xff]   ;;  %v1732_v6 = vld [vmem:[%s2215_s1 + $0x50] sm:$0xff]   ;;  %v1819_v30 = vmov 0.0   ;;  %vm1820_vm0 = vmmov 0   ;;  %v756_v49 = vlaneseq  ;;  %vm948_vm1 = vcmask 1042434  }
  0x18   : > { %v1728_v2 = vld [vmem:[%s2215_s1] sm:$0xff]   ;;  %1577 = vmatprep.subr.bf16.mxu0 %v1727_v1  ;;  %v1731_v5 = vld [vmem:[%s2215_s1 + $0x8] sm:$0xff]   ;;  %v1734_v8 = vld [vmem:[%s2215_s1 + $0x10] sm:$0xff]   ;;  %v1821_v47 = vmov 1983009808   ;;  %vm950_vm2 = vcmask 1043459  }
  0x19   : > { %1578 = vmatpush3.bf16.msra.mxu0 %v1728_v2  ;;  %v1730_v4 = vld [vmem:[%s2215_s1 + $0x80] sm:$0xff]   ;;  %v1733_v7 = vld [vmem:[%s2215_s1 + $0x88] sm:$0xff]   ;;  %v1735_v9 = vld [vmem:[%s2215_s1 + $0x58] sm:$0xff]   ;;  %v754_v48 = vunpack.c.l.s4 %v1821_v47  ;;  %v757_v58 = vshrl.u32 %v756_v49, 7  ;;  %vm962_vm3 = vcmask 1040384   ;;  %vm1217_vm4 = vcmask 1041409  }
  0x1a   : > { %1579 = vmatprep.subr.bf16.mxu0 %v1729_v3  ;;  %1638 = vmatprep.subr.bf16.mxu1 %v1730_v4  ;;  %v1736_v10 = vld [vmem:[%s2215_s1 + $0x90] sm:$0xff]   ;;  %v1737_v11 = vld [vmem:[%s2215_s1 + $0x18] sm:$0xff]   ;;  %v1738_v12 = vld [vmem:[%s2215_s1 + $0x60] sm:$0xff]   ;;  %vm1221_vm5 = vcmask 1044484   ;;  %vm1223_vm6 = vcmask 1045509   ;;  %vm1225_vm7 = vcmask 1046534  }
  0x1b   : > { %1639 = vmatpush3.bf16.msra.mxu1 %v1730_v4  ;;  %v1739_v13 = vld [vmem:[%s2215_s1 + $0x98] sm:$0xff]   ;;  %v1740_v14 = vld [vmem:[%s2215_s1 + $0x20] sm:$0xff]   ;;  %v1741_v16 = vld [vmem:[%s2215_s1 + $0x68] sm:$0xff]   ;;  %v755_v57 = vunpack.c.0.s8 %v754_v48  ;;  %vm1227_vm8 = vcmask 1047559  }
  0x1c   : > { %1640 = vmatprep.subr.bf16.mxu1 %v1733_v7  ;;  %v1742_v15 = vld [vmem:[%s2215_s1 + $0xa0] sm:$0xff]   ;;  %v1743_v17 = vld [vmem:[%s2215_s1 + $0x28] sm:$0xff]   ;;  %v1744_v19 = vld [vmem:[%s2215_s1 + $0x70] sm:$0xff]  }
  0x1d   : > { %1580 = vmatpush3.bf16.msra.mxu0 %v1731_v5  ;;  %v1745_v18 = vld [vmem:[%s2215_s1 + $0xa8] sm:$0xff]   ;;  %v1746_v20 = vld [vmem:[%s2215_s1 + $0x30] sm:$0xff]   ;;  %v1747_v21 = vld [vmem:[%s2215_s1 + $0x78] sm:$0xff]   ;;  %v2031_v4 = vsub.s32 %v755_v57, %v757_v58 }
  0x1e   : > { %1581 = vmatprep.subr.bf16.mxu0 %v1732_v6  ;;  %v1748_v22 = vld [vmem:[%s2215_s1 + $0xb0] sm:$0xff]   ;;  %v1749_v24 = vld [vmem:[%s2215_s1 + $0x38] sm:$0xff]   ;;  %v1750_v27 = vld [vmem:[%s1900_s16] ss:$12 sps:$4 sm:$0xff]  }
  0x1f   : > { %1641 = vmatpush3.bf16.msra.mxu1 %v1733_v7  ;;  %v1752_v23 = vld [vmem:[%s1900_s16 + $0x4] ss:$12 sps:$4 sm:$0xff]   ;;  %v1754_v25 = vld [vmem:[%s1900_s16 + $0x8] ss:$12 sps:$4 sm:$0xff]   ;;  %v1753_v26 = vld [vmem:[%s2215_s1 + $0xb8] sm:$0xff]  }
  0x20   : > { %1642 = vmatprep.subr.bf16.mxu1 %v1736_v10  ;;  %642 = vmatprep.mubr.bf16.mxu0 %v1752_v23  ;;  %v1756_v28 = vld [vmem:[%s1900_s16 + $0x1c] ss:$12 sps:$4 sm:$0xff]   ;;  %v1759_v29 = vld [vmem:[%s2218_s4] sm:$0xff]   ;;  %v1764_v36 = vld [vmem:[%s2218_s4 + $0x10] sm:$0xff]  }
  0x21   : > { %1582 = vmatpush3.bf16.msra.mxu0 %v1734_v8  ;;  %1654 = vmatprep.mubr.bf16.mxu1 %v1754_v25  ;;  %v1755_v31 = vld [vmem:[%s1900_s16 + $0x20] ss:$12 sps:$4 sm:$0xff]   ;;  %v1765_v32 = vld [vmem:[%s1900_s16 + $0x38] ss:$12 sps:$4 sm:$0xff]   ;;  %v1766_v37 = vld [vmem:[%s1900_s16 + $0x50] ss:$12 sps:$4 sm:$0xff]  }
  0x22   : > { %1583 = vmatprep.subr.bf16.mxu0 %v1735_v9  ;;  %v1760_v33 = vld [vmem:[%s2218_s4 + $0x8] sm:$0xff]   ;;  %v1758_v34 = vld [vmem:[%s1900_s16 + $0x18] ss:$12 sps:$4 sm:$0xff]   ;;  %v1761_v35 = vld [vmem:[%s1900_s16 + $0x34] ss:$12 sps:$4 sm:$0xff]  }
  0x23   : > { %1643 = vmatpush3.bf16.msra.mxu1 %v1736_v10  ;;  %v1767_v38 = vld [vmem:[%s2218_s4 + $0x18] sm:$0xff]   ;;  %v1771_v41 = vld [vmem:[%s2218_s4 + $0x20] sm:$0xff]   ;;  %v1772_v42 = vld [vmem:[%s2218_s4 + $0x28] sm:$0xff]  }
  0x24   : > { %1644 = vmatprep.subr.bf16.mxu1 %v1739_v13  ;;  %v1763_v39 = vld [vmem:[%s1900_s16 + $0x30] ss:$12 sps:$4 sm:$0xff]   ;;  %v1768_v40 = vld [vmem:[%s1900_s16 + $0x4c] ss:$12 sps:$4 sm:$0xff]   ;;  %v1770_v43 = vld [vmem:[%s1900_s16 + $0x48] ss:$12 sps:$4 sm:$0xff]  }
  0x25   : > { %1584 = vmatpush3.bf16.msra.mxu0 %v1737_v11  ;;  %v1773_v44 = vld [vmem:[%s2218_s4 + $0x30] sm:$0xff]   ;;  %v1774_v45 = vld [vmem:[%s2218_s4 + $0x38] sm:$0xff]   ;;  %v1775_v46 = vld [vmem:[%s1890_s10] sm:$0xff]  }
  0x26   : > { %1585 = vmatprep.subr.bf16.mxu0 %v1738_v12  ;;  %v2023_v52 = vld [vmem:[%s2216_s2] ss:$0 sm:$0xff]  ;;  %v2040_v10 = vld [vmem:[#allocation2 + $0x8] sm:$0xff] }
  0x27   : > { %1645 = vmatpush3.bf16.msra.mxu1 %v1739_v13  ;;  %v2026_v62 = vld [vmem:[#allocation2] sm:$0xff] }
  0x28   : > { %1646 = vmatprep.subr.bf16.mxu1 %v1742_v15  ;;  %v1047_v0 = vcombine.high %v2026_v62, %v2026_v62  ;;  %v2035_v7 = vrot.slane %v2026_v62, %v2031_v4 }
  0x29   : > { %1586 = vmatpush3.bf16.msra.mxu0 %v1740_v14 }
  0x2a   : > { %1587 = vmatprep.subr.bf16.mxu0 %v1741_v16  ;;  %v2038_v9 = vrot.slane %v1047_v0, %v2031_v4  ;;  %v1064_v0 = vcombine.high %v2040_v10, %v2040_v10 }
  0x2b   : > { %1647 = vmatpush3.bf16.msra.mxu1 %v1742_v15 }
  0x2c   : > { %1648 = vmatprep.subr.bf16.mxu1 %v1745_v18 }
  0x2d   : > { %1588 = vmatpush3.bf16.msra.mxu0 %v1743_v17 }
  0x2e   : > { %1589 = vmatprep.subr.bf16.mxu0 %v1744_v19 }
  0x2f   : > { %1649 = vmatpush3.bf16.msra.mxu1 %v1745_v18 }
  0x30   : > { %1650 = vmatprep.subr.bf16.mxu1 %v1748_v22 }
  0x31   : > { %1590 = vmatpush3.bf16.msra.mxu0 %v1746_v20  ;;  %v2047_v20 = vrot.slane %v2040_v10, %v2031_v4 }
  0x32   : > { %1591 = vmatprep.subr.bf16.mxu0 %v1747_v21  ;;  %v2049_v21 = vsub.s32 1, %v757_v58 }
  0x33   : > { %1651 = vmatpush3.bf16.msra.mxu1 %v1748_v22  ;;  %v2053_v22 = vcombine.high %v2035_v7, %v2035_v7 }
  0x34   : > { %1652 = vmatprep.subr.bf16.mxu1 %v1753_v26 }
  0x35   : > { %1592 = vmatpush3.bf16.msra.mxu0 %v1749_v24  ;;  %v2059_v24 = vcombine.high %v2038_v9, %v2038_v9 }
  0x36   : > { %1662 = vmatprep.subr.bf16.mxu0 %v1819_v30 }
  0x37   : > { %1653 = vmatpush3.bf16.msra.mxu1 %v1753_v26 }
  0x38   : > { %643 = vmatmul.mubr.bf16.vlgmr.msra.gmra.mrb[0].mxu0 %v1750_v27 }
  0x39   : > { %650 = vmatprep.mubr.bf16.mxu0 %v1756_v28  ;;  %1663 = vmatpush3.bf16.msra.mxu0 %v1759_v29 }
  0x3a   : > { %1664 = vmatprep.subr.bf16.mxu0 %v1819_v30  ;;  %1655 = vmatmul.mubr.bf16.vlgmr.msra.gmra.mrb[0].mxu1 %v1755_v31 }
  0x3b   : > { %1658 = vmatprep.mubr.bf16.mxu1 %v1765_v32 }
  0x3d   : > { %1665 = vmatpush3.bf16.msra.mxu0 %v1760_v33  ;;  %v1081_v33 = vrot.slane %v2035_v7, 1 }
  0x3e   : > { %1666 = vmatprep.subr.bf16.mxu0 %v1819_v30 }
  0x40   : > { %651 = vmatmul.mubr.bf16.gmra.mrb[4].mxu0 %v1758_v34 }
  0x41   : > { %658 = vmatprep.mubr.bf16.mxu0 %v1761_v35  ;;  %1667 = vmatpush3.bf16.msra.mxu0 %v1764_v36  ;;  %v2067_v35 = vcombine.high %v2047_v20, %v2047_v20  ;;  %v1082_v36 = vrot.slane %v2053_v22, 1 }
  0x42   : > { %1668 = vmatprep.subr.bf16.mxu0 %v1819_v30  ;;  %1659 = vmatmul.mubr.bf16.gmra.mrb[4].mxu1 %v1766_v37  ;;  %v2070_v37 = vsub.s32 0, %v757_v58 }
  0x45   : > { %1669 = vmatpush3.bf16.msra.mxu0 %v1767_v38 }
  0x46   : > { %1670 = vmatprep.subr.bf16.mxu0 %v1819_v30 }
  0x48   : > { %659 = vmatmul.mubr.bf16.gmra.mrb[8].mxu0 %v1763_v39 }
  0x49   : > { %666 = vmatprep.mubr.bf16.mxu0 %v1768_v40  ;;  %1671 = vmatpush3.bf16.msra.mxu0 %v1771_v41  ;;  %v1083_v40 = vrot.slane %v2038_v9, 1 }
  0x4a   : > { %1672 = vmatprep.subr.bf16.mxu0 %v1819_v30 }
  0x4d   : > { %1673 = vmatpush3.bf16.msra.mxu0 %v1772_v42 }
  0x4e   : > { %1674 = vmatprep.subr.bf16.mxu0 %v1819_v30 }
  0x50   : > { %667 = vmatmul.mubr.bf16.gmra.mrb[12].mxu0 %v1770_v43 }
  0x51   : > { %1675 = vmatpush3.bf16.msra.mxu0 %v1773_v44  ;;  %1678 = vmatprep.mubr.msk.bf16.mxu0 %vm1820_vm0, %v1819_v30  ;;  %v1084_v44 = vrot.slane %v2059_v24, 1 }
  0x52   : > { %1676 = vmatprep.subr.bf16.mxu0 %v1819_v30 }
  0x55   : > { %1677 = vmatpush3.bf16.msra.mxu0 %v1774_v45  ;;  %v1085_v45 = vrot.slane %v2047_v20, 1 }
  0x58   : > { %1679 = vmatmul.mubr.bf16.vlgmr.msra.gmra.mrb[16].mxu0 %v1775_v46 }
 0x10b   : > { %v1593_v50 = vpop.f32.mrb[0].mxu0 }
 0x10c   : > { %v1594_v51 = vpop.f32.mrb[1].mxu0 }
 0x10d   : > { %v1595_v53 = vadd.f32 %v1594_v51, %v1593_v50  ;;  %v1596_v54 = vpop.f32.mrb[2].mxu0  ;;  %v1656_v56 = vpop.f32.mrb[0].mxu1 }
 0x10e   : > { %v1597_v55 = vpop.f32.mrb[3].mxu0  ;;  %v709_v61 = vpop.f32.mrb[1].mxu1 }
 0x10f   : > { %v1598_v59 = vadd.f32 %v1597_v55, %v1596_v54  ;;  %v645_v60 = vadd.f32 %v1595_v53, %v2023_v52  ;;  %v1657_v63 = vpop.f32.mrb[2].mxu1  ;;  %v1086_v55 = vrot.slane %v2067_v35, 1 }
 0x110   : > { %v712_v3 = vpop.f32.mrb[3].mxu1 }
 0x111   : > { %v710_v1 = vadd.f32 %v709_v61, %v645_v60  ;;  %v648_v2 = vadd.f32 %v1598_v59, %v2023_v52 }
 0x113   : > { %v713_v5 = vadd.f32 %v712_v3, %v648_v2  ;;  %v1599_v6 = vpop.f32.mrb[4].mxu0 }
 0x114   : > { %v1600_v8 = vpop.f32.mrb[5].mxu0 }
 0x115   : > { %v740_v11 = vmax.f32 %v710_v1, %v713_v5  ;;  %v1601_v12 = vadd.f32 %v1600_v8, %v1599_v6  ;;  %v1602_v13 = vpop.f32.mrb[6].mxu0  ;;  %v2042_v15 = vpop.f32.mrb[4].mxu1 }
 0x116   : > { %v1603_v14 = vpop.f32.mrb[7].mxu0  ;;  %v725_v19 = vpop.f32.mrb[5].mxu1 }
 0x117   : > { %v744_v16 = vmax.f32 %v740_v11, -3e+38  ;;  %v653_v17 = vadd.f32 %v1601_v12, %v2023_v52  ;;  %v1604_v18 = vadd.f32 %v1603_v14, %v1602_v13  ;;  %v2055_v23 = vpop.f32.mrb[6].mxu1 }
 0x118   : > { %v728_v29 = vpop.f32.mrb[7].mxu1 }
 0x119   : > { %v752_v25 = vcombine.high %v744_v16, %v744_v16  ;;  %v759_v26 = vrot.slane %v744_v16, %v2031_v4  ;;  %v718_v27 = vadd.f32 %v1656_v56, %v653_v17  ;;  %v656_v28 = vadd.f32 %v1604_v18, %v2023_v52 }
 0x11b   : > { %v766_v31 = vrot.slane %v752_v25, %v2031_v4  ;;  %v767_v32 = vcombine.high %v759_v26, %v759_v26  ;;  %v1605_v34 = vpop.f32.mrb[8].mxu0  ;;  %v2072_v38 = vadd.f32 %v1657_v63, %v656_v28  ;;  %v903_v42 = vrot.slane %v759_v26, %v2049_v21 }
 0x11c   : > { %v1606_v39 = vpop.f32.mrb[9].mxu0  ;;  %v1538_v51 = vrot.slane %v759_v26, 9 }
 0x11d   : > { %v768_v41 = vcombine.high %v766_v31, %v766_v31  ;;  %v1608_v43 = vpop.f32.mrb[10].mxu0  ;;  %v907_v46 = vrot.slane %v767_v32, %v2049_v21  ;;  %v911_v47 = vrot.slane %v766_v31, %v2049_v21  ;;  %v741_v48 = vmax.f32 %v718_v27, %v2072_v38 }
 0x11e   : > { %v1607_v49 = vadd.f32 %v1606_v39, %v1605_v34  ;;  %v1609_v50 = vpop.f32.mrb[11].mxu0  ;;  %v1539_v53 = vrot.slane %v767_v32, 9  ;;  %v1540_v56 = vrot.slane %v766_v31, 9  ;;  %v884_v8 = vmax.f32 %v759_v26, %v1538_v51 }
 0x11f   : > { %v1610_v54 = vadd.f32 %v1609_v50, %v1608_v43  ;;  %v949_v57 = vsel %vm948_vm1, %v907_v46, %v903_v42  ;;  %v745_v58 = vmax.f32 %v741_v48, %v713_v5  ;;  %v1541_v60 = vrot.slane %v768_v41, 9 }
 0x120   : > { %v661_v59 = vadd.f32 %v1607_v49, %v2023_v52  ;;  %v951_v61 = vsel %vm950_vm2, %v911_v47, %v949_v57  ;;  %v885_v11 = vmax.f32 %v767_v32, %v1539_v53  ;;  %v886_v14 = vmax.f32 %v766_v31, %v1540_v56 }
 0x121   : > { %v664_v63 = vadd.f32 %v1610_v54, %v2023_v52  ;;  %v963_v1 = vsel %vm962_vm3, -3e+38, %v951_v61  ;;  %v769_v2 = vcombine.high %v745_v58, %v745_v58  ;;  %v776_v3 = vrot.slane %v745_v58, %v2031_v4 }
 0x122   : > { %v726_v6 = vadd.f32 %v725_v19, %v661_v59  ;;  %v977_v5 = vrot.slane %v963_v1, %v2031_v4  ;;  %v887_v19 = vmax.f32 %v768_v41, %v1541_v60 }
 0x123   : > { %v2091_v12 = vadd.f32 %v728_v29, %v664_v63  ;;  %v1611_v13 = vpop.f32.mrb[12].mxu0  ;;  %v783_v16 = vrot.slane %v769_v2, %v2031_v4  ;;  %v784_v17 = vcombine.high %v776_v3, %v776_v3  ;;  %v1542_v18 = vrot.slane %v776_v3, 9 }
 0x124   : > { %v1612_v25 = vpop.f32.mrb[13].mxu0  ;;  %v978_v27 = vcombine.high %v977_v5, %v977_v5  ;;  %v1003_v28 = vrot.slane %v977_v5, 1  ;;  %v1027_v34 = vmax.f32 %v884_v8, %v977_v5  ;;  %v915_v51 = vrot.slane %v776_v3, %v2049_v21 }
 0x125   : > { %v742_v39 = vmax.f32 %v726_v6, %v2091_v12  ;;  %v2095_v42 = vpop.f32.mrb[14].mxu0  ;;  %v785_v26 = vcombine.high %v783_v16, %v783_v16  ;;  %v1543_v32 = vrot.slane %v784_v17, 9  ;;  %v1544_v29 = vrot.slane %v783_v16, 9 }
 0x126   : > { %v2097_v43 = vpop.f32.mrb[15].mxu0  ;;  %v1004_v31 = vrot.slane %v978_v27, 1  ;;  %v1028_v46 = vmax.f32 %v885_v11, %v1003_v28  ;;  %v1029_v47 = vmax.f32 %v886_v14, %v978_v27  ;;  %v1105_v48 = vsub.f32 %v1027_v34, %v2035_v7 }
 0x127   : > { %v1545_v49 = vrot.slane %v785_v26, 9  ;;  %v888_v50 = vmax.f32 %v776_v3, %v1542_v18  ;;  %v919_v53 = vrot.slane %v784_v17, %v2049_v21  ;;  %v889_v57 = vmax.f32 %v784_v17, %v1543_v32 }
 0x128   : > { %v1030_v54 = vmax.f32 %v887_v19, %v1004_v31  ;;  %v1106_v41 = vsub.f32 %v1028_v46, %v1081_v33  ;;  %v1107_v56 = vsub.f32 %v1029_v47, %v2053_v22  ;;  %v1121_v58 = vmul.f32 0.5, %v1105_v48 }
 0x129   : > { %v923_v59 = vrot.slane %v783_v16, %v2049_v21  ;;  %v952_v60 = vsel %vm948_vm1, %v919_v53, %v915_v51  ;;  %v746_v61 = vmax.f32 %v742_v39, %v2072_v38  ;;  %v890_v3 = vmax.f32 %v783_v16, %v1544_v29 }
 0x12a   : > { %v1108_v63 = vsub.f32 %v1030_v54, %v1082_v36  ;;  %v1122_v1 = vmul.f32 0.5, %v1106_v41  ;;  %v1123_v2 = vmul.f32 0.5, %v1107_v56  ;;  %v1613_v11 = vadd.f32 %v1612_v25, %v1611_v13 }
 0x12b   : > { %v1361_v6 = vpop.f32.mrb[16].mxu0  ;;  %v953_v7 = vsel %vm950_vm2, %v923_v59, %v952_v60  ;;  %v786_v33 = vcombine.high %v746_v61, %v746_v61  ;;  %v793_v8 = vrot.slane %v746_v61, %v2031_v4  ;;  %v891_v18 = vmax.f32 %v785_v26, %v1545_v49 }
 0x12c   : > { %v1680_v5 = vpop.f32.mrb[17].mxu0  ;;  %v1124_v14 = vmul.f32 0.5, %v1108_v63  ;;  %v1160_v17 = vrot.slane %v1122_v1, %v2070_v37  ;;  %v964_v38 = vsel %vm962_vm3, -3e+38, %v953_v7  ;;  %v1156_v22 = vrot.slane %v1121_v58, %v2070_v37 }
 0x12d   : > { %v2114_v27 = vpop.f32.mrb[18].mxu0  ;;  %v985_v36 = vrot.slane %v964_v38, %v2031_v4  ;;  %v800_v16 = vrot.slane %v786_v33, %v2031_v4  ;;  %v801_v28 = vcombine.high %v793_v8, %v793_v8  ;;  %v1164_v39 = vrot.slane %v1123_v2, %v2070_v37  ;;  %v1554_v33 = vld [vmem:[%s2219_s5] ss:$0 sm:$0xff] }
 0x12e   : > { %v1681_v34 = vpop.f32.mrb[19].mxu0  ;;  %v1168_v13 = vrot.slane %v1124_v14, %v2070_v37  ;;  %v1546_v25 = vrot.slane %v793_v8, 9  ;;  %v669_v19 = vadd.f32 %v1613_v11, %v2023_v52  ;;  %v1218_v46 = vsel %vm1217_vm4, %v1160_v17, %v1156_v22 }
 0x12f   : > { %v986_v26 = vcombine.high %v985_v36, %v985_v36  ;;  %v1005_v32 = vrot.slane %v985_v36, 1  ;;  %v1031_v29 = vmax.f32 %v888_v50, %v985_v36  ;;  %v802_v31 = vcombine.high %v800_v16, %v800_v16 }
 0x130   : > { %v1547_v47 = vrot.slane %v801_v28, 9  ;;  %v927_v48 = vrot.slane %v793_v8, %v2049_v21  ;;  %v931_v49 = vrot.slane %v801_v28, %v2049_v21  ;;  %v1548_v41 = vrot.slane %v800_v16, 9 }
 0x131   : > { %v1032_v51 = vmax.f32 %v889_v57, %v1005_v32  ;;  %v1033_v53 = vmax.f32 %v890_v3, %v986_v26  ;;  %v1109_v54 = vsub.f32 %v1031_v29, %v2038_v9  ;;  %v1549_v56 = vrot.slane %v802_v31, 9 }
 0x132   : > { %v892_v58 = vmax.f32 %v793_v8, %v1546_v25  ;;  %v935_v59 = vrot.slane %v800_v16, %v2049_v21  ;;  %v954_v50 = vsel %vm948_vm1, %v931_v49, %v927_v48  ;;  %v893_v61 = vmax.f32 %v801_v28, %v1547_v47 }
 0x133   : > { %v1125_v60 = vmul.f32 0.5, %v1109_v54  ;;  %v734_v63 = vadd.f32 %v2042_v15, %v669_v19  ;;  %v1616_v1 = vadd.f32 %v2097_v43, %v2095_v42  ;;  %v1006_v2 = vrot.slane %v986_v26, 1 }
 0x134   : > { %v955_v57 = vsel %vm950_vm2, %v935_v59, %v954_v50  ;;  %v1110_v3 = vsub.f32 %v1032_v51, %v1083_v40  ;;  %v1111_v7 = vsub.f32 %v1033_v53, %v2059_v24  ;;  %v1219_v42 = vsel %vm948_vm1, %v1164_v39, %v1218_v46 }
 0x135   : > { %v1172_v8 = vrot.slane %v1125_v60, %v2070_v37  ;;  %v965_v15 = vsel %vm962_vm3, -3e+38, %v955_v57  ;;  %v672_v11 = vadd.f32 %v1616_v1, %v2023_v52  ;;  %v1034_v5 = vmax.f32 %v891_v18, %v1006_v2  ;;  %v1368_v52 = vld [vmem:[#allocation3] sm:$0xff] }
 0x136   : > { %v993_v43 = vrot.slane %v965_v15, %v2031_v4  ;;  %v1126_v14 = vmul.f32 0.5, %v1110_v3  ;;  %v1127_v9 = vmul.f32 0.5, %v1111_v7  ;;  %v894_v40 = vmax.f32 %v800_v16, %v1548_v41 }
 0x137   : > { %v737_v17 = vadd.f32 %v2055_v23, %v672_v11  ;;  %v1220_v38 = vsel %vm950_vm2, %v1168_v13, %v1219_v42  ;;  %v1362_v22 = vadd.f32 %v1554_v33, %v1361_v6  ;;  %v1112_v25 = vsub.f32 %v1034_v5, %v1084_v44  ;;  %v1369_v11 = vld [vmem:[#allocation3 + $0x8] sm:$0xff] }
 0x138   : > { %v994_v36 = vcombine.high %v993_v43, %v993_v43  ;;  %v1007_v28 = vrot.slane %v993_v43, 1  ;;  %v1035_v34 = vmax.f32 %v892_v58, %v993_v43  ;;  %v1176_v39 = vrot.slane %v1126_v14, %v2070_v37 }
 0x139   : > { %v743_v19 = vmax.f32 %v734_v63, %v737_v17  ;;  %v1180_v18 = vrot.slane %v1127_v9, %v2070_v37  ;;  %v1222_v26 = vsel %vm1221_vm5, %v1172_v8, %v1220_v38  ;;  %v895_v16 = vmax.f32 %v802_v31, %v1549_v56 }
 0x13a   : > { %v1008_v32 = vrot.slane %v994_v36, 1  ;;  %v1036_v23 = vmax.f32 %v893_v61, %v1007_v28  ;;  %v1128_v29 = vmul.f32 0.5, %v1112_v25  ;;  %v1037_v13 = vmax.f32 %v894_v40, %v994_v36 }
 0x13b   : > { %v747_v6 = vmax.f32 %v743_v19, %v2091_v12  ;;  %v1224_v46 = vsel %vm1223_vm6, %v1176_v39, %v1222_v26  ;;  %v1370_v47 = vsub.f32 %v1362_v22, %v1368_v52  ;;  %v1113_v49 = vsub.f32 %v1035_v34, %v2047_v20 }
 0x13c   : > { %v1038_v24 = vmax.f32 %v895_v16, %v1008_v32  ;;  %v1184_v44 = vrot.slane %v1128_v29, %v2070_v37  ;;  %v1226_v48 = vsel %vm1225_vm7, %v1180_v18, %v1224_v46  ;;  %v1114_v54 = vsub.f32 %v1036_v23, %v1085_v45 }
 0x13d   : > { %v803_v51 = vcombine.high %v747_v6, %v747_v6  ;;  %v810_v53 = vrot.slane %v747_v6, %v2031_v4  ;;  %v1372_v31 = vmul.f32 0.5, %v1370_v47  ;;  %v1078_v12 = vrot.slane %v1064_v0, %v2031_v4 }
 0x13e   : > { %v1228_v41 = vsel %vm1227_vm8, %v1184_v44, %v1226_v48  ;;  %v1115_v59 = vsub.f32 %v1037_v13, %v2067_v35  ;;  %v1365_v50 = vadd.f32 %v1554_v33, %v2114_v27  ;;  %v1116_v20 = vsub.f32 %v1038_v24, %v1086_v55 }
 0x13f   : > { %v817_v56 = vrot.slane %v803_v51, %v2031_v4  ;;  %v818_v58 = vcombine.high %v810_v53, %v810_v53  ;;  %v1238_v60 = vadd.f32 %v1228_v41, %v2026_v62  ;;  %v1374_v61 = vadd.f32 %v1372_v31, %v1368_v52 }
 0x140   : > { %v1129_v45 = vmul.f32 0.5, %v1113_v49  ;;  %v1550_v1 = vrot.slane %v810_v53, 9  ;;  %v939_v57 = vrot.slane %v810_v53, %v2049_v21  ;;  %v1130_v2 = vmul.f32 0.5, %v1114_v54 }
 0x141   : > { %v819_v63 = vcombine.high %v817_v56, %v817_v56  ;;  %v943_v0 = vrot.slane %v818_v58, %v2049_v21  ;;  %v947_v3 = vrot.slane %v817_v56, %v2049_v21  ;;  %vm1240_vm9 = vcmp.ge.f32.partialorder %v1238_v60, 1.0 }
 0x142   : > { %vm1376_vm10 = vcmp.ge.f32.partialorder %v1374_v61, 1.0  ;;  %v1551_v7 = vrot.slane %v818_v58, 9  ;;  %v1552_v27 = vrot.slane %v817_v56, 9  ;;  %v1242_v62 = vsel %vm1240_vm9, 1.0, %v1819_v30 }
 0x143   : > { %v1131_v33 = vmul.f32 0.5, %v1115_v59  ;;  %v956_v35 = vsel %vm948_vm1, %v943_v0, %v939_v57  ;;  %v1244_v55 = vsel %vm1240_vm9, 0.0, %v1238_v60  ;;  %v1378_v8 = vsel %vm1376_vm10, 1.0, %v1819_v30 }
 0x144   : > { %v1380_v15 = vsel %vm1376_vm10, 0.0, %v1374_v61  ;;  %v957_v42 = vsel %vm950_vm2, %v947_v3, %v956_v35  ;;  %1246 = vst [vmem:[#allocation2] sm:$0xff] %v1244_v55  ;;  %v1384_v43 = vadd.f32 %v1378_v8, %v1242_v62  ;;  %v1080_v21 = vcombine.high %v1078_v12, %v1078_v12 }
 0x145   : > { %1382 = vst [vmem:[#allocation3] sm:$0xff] %v1380_v15  ;;  %v1553_v5 = vrot.slane %v819_v63, 9  ;;  %v966_v14 = vsel %vm962_vm3, -3e+38, %v957_v42  ;;  %v1087_v9 = vrot.slane %v1078_v12, 1  ;;  %v1192_v40 = vrot.slane %v1130_v2, %v2070_v37 }
 0x146   : > { %v896_v17 = vmax.f32 %v810_v53, %v1550_v1  ;;  %v1001_v38 = vrot.slane %v966_v14, %v2031_v4  ;;  %v1188_v22 = vrot.slane %v1129_v45, %v2070_v37  ;;  %v1371_v36 = vsub.f32 %v1365_v50, %v1369_v11 }
 0x147   : > { %v897_v28 = vmax.f32 %v818_v58, %v1551_v7  ;;  %v898_v34 = vmax.f32 %v817_v56, %v1552_v27  ;;  %v1132_v25 = vmul.f32 0.5, %v1116_v20  ;;  %v1196_v52 = vrot.slane %v1131_v33, %v2070_v37 }
 0x148   : > { %v1002_v19 = vcombine.high %v1001_v38, %v1001_v38  ;;  %v1009_v39 = vrot.slane %v1001_v38, 1  ;;  %v1039_v18 = vmax.f32 %v896_v17, %v1001_v38  ;;  %v1229_v26 = vsel %vm1217_vm4, %v1192_v40, %v1188_v22 }
 0x149   : > { %v899_v16 = vmax.f32 %v819_v63, %v1553_v5  ;;  %v1088_v32 = vrot.slane %v1080_v21, 1  ;;  %v1373_v23 = vmul.f32 0.5, %v1371_v36  ;;  %v1200_v46 = vrot.slane %v1132_v25, %v2070_v37 }
 0x14a   : > { %v1040_v29 = vmax.f32 %v897_v28, %v1009_v39  ;;  %v1041_v13 = vmax.f32 %v898_v34, %v1002_v19  ;;  %v1010_v6 = vrot.slane %v1002_v19, 1  ;;  %v1117_v4 = vsub.f32 %v1039_v18, %v1078_v12 }
 0x14b   : > { %v1230_v47 = vsel %vm948_vm1, %v1196_v52, %v1229_v26  ;;  %v1375_v24 = vadd.f32 %v1373_v23, %v1369_v11 }
 0x14c   : > { %v1042_v44 = vmax.f32 %v899_v16, %v1010_v6  ;;  %v1118_v48 = vsub.f32 %v1040_v29, %v1087_v9  ;;  %v1119_v49 = vsub.f32 %v1041_v13, %v1080_v21  ;;  %v1133_v51 = vmul.f32 0.5, %v1117_v4 }
 0x14d   : > { %vm1377_vm11 = vcmp.ge.f32.partialorder %v1375_v24, 1.0  ;;  %v1231_v56 = vsel %vm950_vm2, %v1200_v46, %v1230_v47 }
 0x14e   : > { %v1120_v53 = vsub.f32 %v1042_v44, %v1088_v32  ;;  %v1134_v31 = vmul.f32 0.5, %v1118_v48  ;;  %v1135_v54 = vmul.f32 0.5, %v1119_v49  ;;  %v1204_v41 = vrot.slane %v1133_v51, %v2070_v37 }
 0x14f   : > { %v1381_v58 = vsel %vm1377_vm11, 0.0, %v1375_v24  ;;  %v1379_v0 = vsel %vm1377_vm11, 1.0, %v1819_v30 }
 0x150   : > { %v1136_v12 = vmul.f32 0.5, %v1120_v53  ;;  %v1208_v59 = vrot.slane %v1134_v31, %v2070_v37  ;;  %v1212_v50 = vrot.slane %v1135_v54, %v2070_v37  ;;  %v1232_v60 = vsel %vm1221_vm5, %v1204_v41, %v1231_v56  ;;  %1383 = vst [vmem:[#allocation3 + $0x8] sm:$0xff] %v1381_v58 }
 0x152   : > { %v1216_v61 = vrot.slane %v1136_v12, %v2070_v37  ;;  %v1233_v20 = vsel %vm1223_vm6, %v1208_v59, %v1232_v60 }
 0x153   : > { %v1234_v45 = vsel %vm1225_vm7, %v1212_v50, %v1233_v20 }
 0x154   : > { %v1235_v63 = vsel %vm1227_vm8, %v1216_v61, %v1234_v45 }
 0x155   : > { %v1239_v1 = vadd.f32 %v1235_v63, %v2040_v10 }
 0x157   : > { %vm1241_vm12 = vcmp.ge.f32.partialorder %v1239_v1, 1.0 }
 0x158   : > { %v1243_v57 = vsel %vm1241_vm12, 1.0, %v1819_v30  ;;  %v1245_v2 = vsel %vm1241_vm12, 0.0, %v1239_v1 }
 0x159   : > { %1247 = vst [vmem:[#allocation2 + $0x8] sm:$0xff] %v1245_v2  ;;  %v1385_v3 = vadd.f32 %v1379_v0, %v1243_v57 }
 0x15b   : > { %v1575_v7 = vpack.c.bf16 %v1385_v3, %v1384_v43 }
 0x15d   : > { %1576 = vst [vmem:[%s1895_s13] sm:$0xff] %v1575_v7  }
 0x15e PF: > { %s16_s25 = sadd.s32 1, %s1816_s25   ;;  %s2221_s21 = smov %s1808_s23 }
 0x15f   : > { %p13_p7 = scmp.ge.s32.totalorder %s16_s25, 6   ;;  %s2222_s22 = smov %s1812_s24 }
 0x160   : > { %s2223_s23 = smov %s2226_s26  ;;  %s2224_s24 = smov %s2230_s27 }
 0x161   :  { %15 = sbr.rel (!%p13_p7) target bundleno = 3 (0x3), region = 81 }

</bundles_post_ra>
